<compile_context>
chip_gen: v6e
topology: v6e:2x2x1
jax: 0.10.0
libtpu: 0.0.40
codegen_flags: <defaults>
</compile_context>

<pallas_src>
import math

import jax
import jax.numpy as jnp
from jax import lax
from jax.experimental import pallas as pl
from jax.experimental.pallas import tpu as pltpu


def _round_up(x, m):
    return (x + m - 1) // m * m


# --------------------------------------------------------------------------
# Fused multi-layer LSTM kernel
# --------------------------------------------------------------------------
def encoder_kernel(x_ref, wih_ref, whh_ref, b_ref, h_out_ref, c_out_ref,
                   act_ref, xproj_ref):
    """Grid axis = layer index (sequential). act_ref carries activations between layers."""
    S, Bp, Hp = act_ref.shape
    layer = pl.program_id(0)

    # Layer 0: the input sequence (padded embeddings) seeds the activation buffer.
    @pl.when(layer == 0)
    def _():
        act_ref[...] = x_ref[...]

    # Hoisted input projection for the whole sequence: one (S*Bp, Hp) x (Hp, 4Hp) GEMM
    # (bf16 operands, f32 accumulation), bias added once here (not per timestep).
    x_all = act_ref[...].reshape(S * Bp, Hp).astype(wih_ref.dtype)
    xproj = jnp.dot(x_all, wih_ref[...], preferred_element_type=jnp.float32)
    xproj = xproj + b_ref[...]                       # (S*Bp, 4Hp) + (1, 4Hp)
    xproj_ref[...] = xproj.reshape(S, Bp, 4 * Hp)

    # Load recurrent weights once before the loop.
    w_hh = whh_ref[...]                              # (Hp, 4Hp) bf16

    def step(t, carry):
        h, c = carry
        # Only the serial recurrence matmul remains inside the loop.
        gates = xproj_ref[t] + jnp.dot(
            h.astype(w_hh.dtype), w_hh, preferred_element_type=jnp.float32)
        # Each gate slice is exactly 128 lanes -> whole-vreg VPU/EUP ops.
        i_g = jax.nn.sigmoid(gates[:, 0 * Hp:1 * Hp])
        f_g = jax.nn.sigmoid(gates[:, 1 * Hp:2 * Hp])
        g_g = jnp.tanh(gates[:, 2 * Hp:3 * Hp])
        o_g = jax.nn.sigmoid(gates[:, 3 * Hp:4 * Hp])
        c_new = f_g * c + i_g * g_g
        h_new = o_g * jnp.tanh(c_new)
        act_ref[t] = h_new                           # becomes next layer's input
        return (h_new, c_new)

    h0 = jnp.zeros((Bp, Hp), jnp.float32)
    c0 = jnp.zeros((Bp, Hp), jnp.float32)
    h_fin, c_fin = lax.fori_loop(0, S, step, (h0, c0), unroll=True)

    h_out_ref[...] = h_fin
    c_out_ref[...] = c_fin


def _encoder_pallas(x, w_ih, w_hh, b):
    """x: (S, Bp, Hp) f32; w_ih/w_hh: (L, Hp, 4Hp) bf16; b: (L, 1, 4Hp) f32."""
    S, Bp, Hp = x.shape
    L = w_ih.shape[0]
    out_shape = (
        jax.ShapeDtypeStruct((L, Bp, Hp), jnp.float32),  # hidden
        jax.ShapeDtypeStruct((L, Bp, Hp), jnp.float32),  # cell
    )
    return pl.pallas_call(
        encoder_kernel,
        grid=(L,),
        in_specs=(
            pl.BlockSpec((S, Bp, Hp), lambda l: (0, 0, 0)),        # x (resident)
            pl.BlockSpec((None, Hp, 4 * Hp), lambda l: (l, 0, 0)),  # W_ih[l]
            pl.BlockSpec((None, Hp, 4 * Hp), lambda l: (l, 0, 0)),  # W_hh[l]
            pl.BlockSpec((None, 1, 4 * Hp), lambda l: (l, 0, 0)),   # bias[l]
        ),
        out_specs=(
            pl.BlockSpec((None, Bp, Hp), lambda l: (l, 0, 0)),      # hidden[l]
            pl.BlockSpec((None, Bp, Hp), lambda l: (l, 0, 0)),      # cell[l]
        ),
        out_shape=out_shape,
        scratch_shapes=[
            pltpu.VMEM((S, Bp, Hp), jnp.float32),       # inter-layer activations
            pltpu.VMEM((S, Bp, 4 * Hp), jnp.float32),   # hoisted input projection
        ],
        compiler_params=pltpu.CompilerParams(
            dimension_semantics=("arbitrary",)),         # layers are serially dependent
    )(x, w_ih, w_hh, b)


# --------------------------------------------------------------------------
# Parameter construction / packing (mirrors PyTorch nn.Embedding + nn.LSTM)
# --------------------------------------------------------------------------
def init_encoder_params(key, input_dim, embed_dim, hidden_dim, n_layers):
    """Synthetic parameters with PyTorch shapes, packed into padded/stacked TPU layout."""
    Hp = _round_up(max(embed_dim, hidden_dim), 128)     # padded per-gate width (lanes)
    keys = jax.random.split(key, 1 + 4 * n_layers)
    embedding = jax.random.normal(keys[0], (input_dim, embed_dim), jnp.float32)

    bound = 1.0 / math.sqrt(hidden_dim)
    wih_list, whh_list, b_list = [], [], []
    for l in range(n_layers):
        d_in = embed_dim if l == 0 else hidden_dim
        k_wih, k_whh, k_bih, k_bhh = keys[1 + 4 * l: 1 + 4 * (l + 1)]
        # PyTorch shapes: weight_ih (4H, d_in), weight_hh (4H, H), biases (4H,)
        w_ih = jax.random.uniform(k_wih, (4 * hidden_dim, d_in), jnp.float32, -bound, bound)
        w_hh = jax.random.uniform(k_whh, (4 * hidden_dim, hidden_dim), jnp.float32, -bound, bound)
        b_ih = jax.random.uniform(k_bih, (4 * hidden_dim,), jnp.float32, -bound, bound)
        b_hh = jax.random.uniform(k_bhh, (4 * hidden_dim,), jnp.float32, -bound, bound)

        # Transpose to (d_in, 4H), split gates, zero-pad each gate block to (Hp, Hp).
        def pack_w(w, d):
            w_t = jnp.transpose(w).reshape(d, 4, hidden_dim)
            w_t = jnp.pad(w_t, ((0, Hp - d), (0, 0), (0, Hp - hidden_dim)))
            return w_t.reshape(Hp, 4 * Hp)

        wih_list.append(pack_w(w_ih, d_in))
        whh_list.append(pack_w(w_hh, hidden_dim))
        b4 = (b_ih + b_hh).reshape(4, hidden_dim)
        b4 = jnp.pad(b4, ((0, 0), (0, Hp - hidden_dim)))
        b_list.append(b4.reshape(1, 4 * Hp))

    return {
        "embedding": embedding,
        "w_ih": jnp.stack(wih_list).astype(jnp.bfloat16),   # (L, Hp, 4Hp)
        "w_hh": jnp.stack(whh_list).astype(jnp.bfloat16),   # (L, Hp, 4Hp)
        "b": jnp.stack(b_list).astype(jnp.float32),          # (L, 1, 4Hp)
        "embed_dim": embed_dim,
        "hidden_dim": hidden_dim,
        "n_layers": n_layers,
        "Hp": Hp,
    }


def encoder_forward(source, params):
    """source: (S, B) int32 -> (hidden, cell), each (n_layers, B, H)."""
    # Embedding lookup + eval-mode dropout (identity): glue in plain JAX.
    emb = jnp.take(params["embedding"], source, axis=0)      # (S, B, E)
    S, B, E = emb.shape
    H = params["hidden_dim"]
    Hp = params["Hp"]
    Bp = max(8, _round_up(B, 8))

    # Pad batch to sublane multiple and feature dim to Hp lanes (exact: zeros contribute 0).
    x = jnp.zeros((S, Bp, Hp), jnp.float32).at[:, :B, :E].set(emb)

    hidden_p, cell_p = _encoder_pallas(x, params["w_ih"], params["w_hh"], params["b"])
    return hidden_p[:, :B, :H], cell_p[:, :B, :H]


# --------------------------------------------------------------------------
# Pure-JAX reference (same packed weights / same math) for a sanity check
# --------------------------------------------------------------------------
def encoder_reference(source, params):
    emb = jnp.take(params["embedding"], source, axis=0)
    S, B, E = emb.shape
    H = params["hidden_dim"]
    Hp = params["Hp"]
    Bp = max(8, _round_up(B, 8))
    act = jnp.zeros((S, Bp, Hp), jnp.float32).at[:, :B, :E].set(emb)

    hs, cs = [], []
    for l in range(params["n_layers"]):
        w_ih, w_hh, b = params["w_ih"][l], params["w_hh"][l], params["b"][l]
        xproj = jnp.dot(act.reshape(S * Bp, Hp).astype(w_ih.dtype), w_ih,
                        preferred_element_type=jnp.float32) + b
        xproj = xproj.reshape(S, Bp, 4 * Hp)

        def step(carry, xp_t):
            h, c = carry
            gates = xp_t + jnp.dot(h.astype(w_hh.dtype), w_hh,
                                   preferred_element_type=jnp.float32)
            i_g = jax.nn.sigmoid(gates[:, 0 * Hp:1 * Hp])
            f_g = jax.nn.sigmoid(gates[:, 1 * Hp:2 * Hp])
            g_g = jnp.tanh(gates[:, 2 * Hp:3 * Hp])
            o_g = jax.nn.sigmoid(gates[:, 3 * Hp:4 * Hp])
            c_new = f_g * c + i_g * g_g
            h_new = o_g * jnp.tanh(c_new)
            return (h_new, c_new), h_new

        init = (jnp.zeros((Bp, Hp), jnp.float32), jnp.zeros((Bp, Hp), jnp.float32))
        (h_fin, c_fin), outs = lax.scan(step, init, xproj)
        act = outs
        hs.append(h_fin)
        cs.append(c_fin)
    hidden = jnp.stack(hs)[:, :B, :H]
    cell = jnp.stack(cs)[:, :B, :H]
    return hidden, cell


if __name__ == "__main__":
    # Small shapes consistent with the module.
    input_dim = 50     # vocab size
    embed_dim = 32
    hidden_dim = 32
    n_layers = 2
    seq_len = 8
    batch = 4

    key = jax.random.PRNGKey(0)
    k_params, k_src = jax.random.split(key)
    params = init_encoder_params(k_params, input_dim, embed_dim, hidden_dim, n_layers)
    source = jax.random.randint(k_src, (seq_len, batch), 0, input_dim, dtype=jnp.int32)

    hidden, cell = encoder_forward(source, params)
    jax.block_until_ready((hidden, cell))

    assert hidden.shape == (n_layers, batch, hidden_dim)
    assert cell.shape == (n_layers, batch, hidden_dim)

    # Sanity check against a pure-JAX reference using identical packed weights.
    h_ref, c_ref = encoder_reference(source, params)
    assert jnp.allclose(hidden, h_ref, atol=1e-2, rtol=1e-2)
    assert jnp.allclose(cell, c_ref, atol=1e-2, rtol=1e-2)

    print("KERNEL_OK")
</pallas_src>

<mosaic_0001>
module attributes {stable_mosaic.version = 11 : i64} {
  func.func @encoder_kernel(%arg0: i32, %arg1: memref<8x8x128xf32, #tpu.memory_space<vmem>>, %arg2: memref<1x128x512xbf16, #tpu.memory_space<vmem>>, %arg3: memref<1x128x512xbf16, #tpu.memory_space<vmem>>, %arg4: memref<1x1x512xf32, #tpu.memory_space<vmem>>, %arg5: memref<1x8x128xf32, #tpu.memory_space<vmem>>, %arg6: memref<1x8x128xf32, #tpu.memory_space<vmem>>, %arg7: memref<8x8x128xf32, #tpu.memory_space<vmem>>, %arg8: memref<8x8x512xf32, #tpu.memory_space<vmem>>) attributes {dimension_semantics = [#tpu.dimension_semantics<arbitrary>], iteration_bounds = array<i64: 2>, scalar_prefetch = 0 : i64, scratch_operands = 2 : i64, tpu.core_type = #tpu.core_type<tc>, window_params = [{pipeline_mode = #tpu.pipeline_mode<synchronous>, transform_indices = @transform_0, window_bounds = array<i64: 8, 8, 128>}, {transform_indices = @transform_1, window_bounds = array<i64: 1, 128, 512>}, {transform_indices = @transform_2, window_bounds = array<i64: 1, 128, 512>}, {transform_indices = @transform_3, window_bounds = array<i64: 1, 1, 512>}, {transform_indices = @transform_4, window_bounds = array<i64: 1, 8, 128>}, {transform_indices = @transform_5, window_bounds = array<i64: 1, 8, 128>}]} {
    %c0_i32 = arith.constant 0 : i32
    %0 = arith.cmpi eq, %arg0, %c0_i32 : i32
    %1 = arith.extui %0 : i1 to i32
    %c0_i32_0 = arith.constant 0 : i32
    %2 = arith.cmpi ne, %1, %c0_i32_0 : i32
    scf.if %2 {
      %c0_88 = arith.constant 0 : index
      %c0_89 = arith.constant 0 : index
      %c0_90 = arith.constant 0 : index
      %305 = vector.load %arg1[%c0_88, %c0_89, %c0_90] : memref<8x8x128xf32, #tpu.memory_space<vmem>>, vector<8x8x128xf32>
      %c0_91 = arith.constant 0 : index
      %c0_92 = arith.constant 0 : index
      %c0_93 = arith.constant 0 : index
      %306 = vector.load %arg7[%c0_91, %c0_92, %c0_93] : memref<8x8x128xf32, #tpu.memory_space<vmem>>, vector<8x8x128xf32>
      tpu.vector_store %arg7[%c0_91, %c0_92, %c0_93], %305 {strides = array<i32>} : memref<8x8x128xf32, #tpu.memory_space<vmem>>, vector<8x8x128xf32>,
    } else {
    }
    %c0 = arith.constant 0 : index
    %c0_1 = arith.constant 0 : index
    %c0_2 = arith.constant 0 : index
    %3 = vector.load %arg7[%c0, %c0_1, %c0_2] : memref<8x8x128xf32, #tpu.memory_space<vmem>>, vector<8x8x128xf32>
    %4 = vector.shape_cast %3 : vector<8x8x128xf32> to vector<64x128xf32>
    %5 = arith.truncf %4 : vector<64x128xf32> to vector<64x128xbf16>
    %c0_3 = arith.constant 0 : index
    %c0_4 = arith.constant 0 : index
    %c0_5 = arith.constant 0 : index
    %6 = vector.load %arg2[%c0_3, %c0_4, %c0_5] : memref<1x128x512xbf16, #tpu.memory_space<vmem>>, vector<1x128x512xbf16>
    %7 = vector.shape_cast %6 : vector<1x128x512xbf16> to vector<128x512xbf16>
    %cst = arith.constant dense<0.000000e+00> : vector<64x512xf32>
    %8 = tpu.matmul %5, %7, %cst {dimension_numbers = #tpu.dot_dimension_numbers<[1], [0], [0], [1], [0, 0, 1, 1], [], []>} : vector<64x128xbf16>, vector<128x512xbf16>, vector<64x512xf32> -> vector<64x512xf32>
    %c0_6 = arith.constant 0 : index
    %c0_7 = arith.constant 0 : index
    %c0_8 = arith.constant 0 : index
    %9 = vector.load %arg4[%c0_6, %c0_7, %c0_8] : memref<1x1x512xf32, #tpu.memory_space<vmem>>, vector<1x1x512xf32>
    %10 = vector.shape_cast %9 : vector<1x1x512xf32> to vector<1x512xf32>
    %11 = vector.broadcast %10 : vector<1x512xf32> to vector<64x512xf32>
    %12 = arith.addf %8, %11 : vector<64x512xf32>
    %13 = vector.shape_cast %12 : vector<64x512xf32> to vector<8x8x512xf32>
    %c0_9 = arith.constant 0 : index
    %c0_10 = arith.constant 0 : index
    %c0_11 = arith.constant 0 : index
    %14 = vector.load %arg8[%c0_9, %c0_10, %c0_11] : memref<8x8x512xf32, #tpu.memory_space<vmem>>, vector<8x8x512xf32>
    tpu.vector_store %arg8[%c0_9, %c0_10, %c0_11], %13 {strides = array<i32>} : memref<8x8x512xf32, #tpu.memory_space<vmem>>, vector<8x8x512xf32>,
    %c0_12 = arith.constant 0 : index
    %c0_13 = arith.constant 0 : index
    %c0_14 = arith.constant 0 : index
    %15 = vector.load %arg3[%c0_12, %c0_13, %c0_14] : memref<1x128x512xbf16, #tpu.memory_space<vmem>>, vector<1x128x512xbf16>
    %16 = vector.shape_cast %15 : vector<1x128x512xbf16> to vector<128x512xbf16>
    %cst_15 = arith.constant 0.000000e+00 : f32
    %17 = vector.broadcast %cst_15 : f32 to vector<8x128xf32>
    %cst_16 = arith.constant 0.000000e+00 : f32
    %18 = vector.broadcast %cst_16 : f32 to vector<8x128xf32>
    %c0_i32_17 = arith.constant 0 : i32
    %19 = arith.index_cast %c0_i32_17 : i32 to index
    %c0_18 = arith.constant 0 : index
    %c0_19 = arith.constant 0 : index
    %20 = vector.load %arg8[%19, %c0_18, %c0_19] : memref<8x8x512xf32, #tpu.memory_space<vmem>>, vector<1x8x512xf32>
    %21 = vector.shape_cast %20 : vector<1x8x512xf32> to vector<8x512xf32>
    %22 = arith.truncf %17 : vector<8x128xf32> to vector<8x128xbf16>
    %cst_20 = arith.constant dense<0.000000e+00> : vector<8x512xf32>
    %23 = tpu.matmul %22, %16, %cst_20 {dimension_numbers = #tpu.dot_dimension_numbers<[1], [0], [0], [1], [0, 0, 1, 1], [], []>} : vector<8x128xbf16>, vector<128x512xbf16>, vector<8x512xf32> -> vector<8x512xf32>
    %24 = arith.addf %21, %23 : vector<8x512xf32>
    %25 = vector.extract_strided_slice %24 {offsets = [0, 0], sizes = [8, 128], strides = [1, 1]} : vector<8x512xf32> to vector<8x128xf32>
    %26 = arith.negf %25 : vector<8x128xf32>
    %27 = math.exp %26 : vector<8x128xf32>
    %cst_21 = arith.constant 1.000000e+00 : f32
    %28 = vector.broadcast %cst_21 : f32 to vector<8x128xf32>
    %29 = arith.addf %28, %27 : vector<8x128xf32>
    %30 = arith.divf %28, %29 : vector<8x128xf32>
    %31 = vector.extract_strided_slice %24 {offsets = [0, 128], sizes = [8, 128], strides = [1, 1]} : vector<8x512xf32> to vector<8x128xf32>
    %32 = arith.negf %31 : vector<8x128xf32>
    %33 = math.exp %32 : vector<8x128xf32>
    %cst_22 = arith.constant 1.000000e+00 : f32
    %34 = vector.broadcast %cst_22 : f32 to vector<8x128xf32>
    %35 = arith.addf %34, %33 : vector<8x128xf32>
    %36 = arith.divf %34, %35 : vector<8x128xf32>
    %37 = vector.extract_strided_slice %24 {offsets = [0, 256], sizes = [8, 128], strides = [1, 1]} : vector<8x512xf32> to vector<8x128xf32>
    %38 = math.tanh %37 : vector<8x128xf32>
    %39 = vector.extract_strided_slice %24 {offsets = [0, 384], sizes = [8, 128], strides = [1, 1]} : vector<8x512xf32> to vector<8x128xf32>
    %40 = arith.negf %39 : vector<8x128xf32>
    %41 = math.exp %40 : vector<8x128xf32>
    %cst_23 = arith.constant 1.000000e+00 : f32
    %42 = vector.broadcast %cst_23 : f32 to vector<8x128xf32>
    %43 = arith.addf %42, %41 : vector<8x128xf32>
    %44 = arith.divf %42, %43 : vector<8x128xf32>
    %45 = arith.mulf %36, %18 : vector<8x128xf32>
    %46 = arith.mulf %30, %38 : vector<8x128xf32>
    %47 = arith.addf %45, %46 : vector<8x128xf32>
    %48 = math.tanh %47 : vector<8x128xf32>
    %49 = arith.mulf %44, %48 : vector<8x128xf32>
    %50 = arith.index_cast %c0_i32_17 : i32 to index
    %c0_24 = arith.constant 0 : index
    %c0_25 = arith.constant 0 : index
    %51 = vector.load %arg7[%50, %c0_24, %c0_25] : memref<8x8x128xf32, #tpu.memory_space<vmem>>, vector<1x8x128xf32>
    %52 = vector.shape_cast %51 : vector<1x8x128xf32> to vector<8x128xf32>
    %53 = vector.shape_cast %49 : vector<8x128xf32> to vector<1x8x128xf32>
    tpu.vector_store %arg7[%50, %c0_24, %c0_25], %53 {strides = array<i32>} : memref<8x8x128xf32, #tpu.memory_space<vmem>>, vector<1x8x128xf32>,
    %c1_i32 = arith.constant 1 : i32
    %54 = arith.index_cast %c1_i32 : i32 to index
    %c0_26 = arith.constant 0 : index
    %c0_27 = arith.constant 0 : index
    %55 = vector.load %arg8[%54, %c0_26, %c0_27] : memref<8x8x512xf32, #tpu.memory_space<vmem>>, vector<1x8x512xf32>
    %56 = vector.shape_cast %55 : vector<1x8x512xf32> to vector<8x512xf32>
    %57 = arith.truncf %49 : vector<8x128xf32> to vector<8x128xbf16>
    %cst_28 = arith.constant dense<0.000000e+00> : vector<8x512xf32>
    %58 = tpu.matmul %57, %16, %cst_28 {dimension_numbers = #tpu.dot_dimension_numbers<[1], [0], [0], [1], [0, 0, 1, 1], [], []>} : vector<8x128xbf16>, vector<128x512xbf16>, vector<8x512xf32> -> vector<8x512xf32>
    %59 = arith.addf %56, %58 : vector<8x512xf32>
    %60 = vector.extract_strided_slice %59 {offsets = [0, 0], sizes = [8, 128], strides = [1, 1]} : vector<8x512xf32> to vector<8x128xf32>
    %61 = arith.negf %60 : vector<8x128xf32>
    %62 = math.exp %61 : vector<8x128xf32>
    %cst_29 = arith.constant 1.000000e+00 : f32
    %63 = vector.broadcast %cst_29 : f32 to vector<8x128xf32>
    %64 = arith.addf %63, %62 : vector<8x128xf32>
    %65 = arith.divf %63, %64 : vector<8x128xf32>
    %66 = vector.extract_strided_slice %59 {offsets = [0, 128], sizes = [8, 128], strides = [1, 1]} : vector<8x512xf32> to vector<8x128xf32>
    %67 = arith.negf %66 : vector<8x128xf32>
    %68 = math.exp %67 : vector<8x128xf32>
    %cst_30 = arith.constant 1.000000e+00 : f32
    %69 = vector.broadcast %cst_30 : f32 to vector<8x128xf32>
    %70 = arith.addf %69, %68 : vector<8x128xf32>
    %71 = arith.divf %69, %70 : vector<8x128xf32>
    %72 = vector.extract_strided_slice %59 {offsets = [0, 256], sizes = [8, 128], strides = [1, 1]} : vector<8x512xf32> to vector<8x128xf32>
    %73 = math.tanh %72 : vector<8x128xf32>
    %74 = vector.extract_strided_slice %59 {offsets = [0, 384], sizes = [8, 128], strides = [1, 1]} : vector<8x512xf32> to vector<8x128xf32>
    %75 = arith.negf %74 : vector<8x128xf32>
    %76 = math.exp %75 : vector<8x128xf32>
    %cst_31 = arith.constant 1.000000e+00 : f32
    %77 = vector.broadcast %cst_31 : f32 to vector<8x128xf32>
    %78 = arith.addf %77, %76 : vector<8x128xf32>
    %79 = arith.divf %77, %78 : vector<8x128xf32>
    %80 = arith.mulf %71, %47 : vector<8x128xf32>
    %81 = arith.mulf %65, %73 : vector<8x128xf32>
    %82 = arith.addf %80, %81 : vector<8x128xf32>
    %83 = math.tanh %82 : vector<8x128xf32>
    %84 = arith.mulf %79, %83 : vector<8x128xf32>
    %85 = arith.index_cast %c1_i32 : i32 to index
    %c0_32 = arith.constant 0 : index
    %c0_33 = arith.constant 0 : index
    %86 = vector.load %arg7[%85, %c0_32, %c0_33] : memref<8x8x128xf32, #tpu.memory_space<vmem>>, vector<1x8x128xf32>
    %87 = vector.shape_cast %86 : vector<1x8x128xf32> to vector<8x128xf32>
    %88 = vector.shape_cast %84 : vector<8x128xf32> to vector<1x8x128xf32>
    tpu.vector_store %arg7[%85, %c0_32, %c0_33], %88 {strides = array<i32>} : memref<8x8x128xf32, #tpu.memory_space<vmem>>, vector<1x8x128xf32>,
    %c2_i32 = arith.constant 2 : i32
    %89 = arith.index_cast %c2_i32 : i32 to index
    %c0_34 = arith.constant 0 : index
    %c0_35 = arith.constant 0 : index
    %90 = vector.load %arg8[%89, %c0_34, %c0_35] : memref<8x8x512xf32, #tpu.memory_space<vmem>>, vector<1x8x512xf32>
    %91 = vector.shape_cast %90 : vector<1x8x512xf32> to vector<8x512xf32>
    %92 = arith.truncf %84 : vector<8x128xf32> to vector<8x128xbf16>
    %cst_36 = arith.constant dense<0.000000e+00> : vector<8x512xf32>
    %93 = tpu.matmul %92, %16, %cst_36 {dimension_numbers = #tpu.dot_dimension_numbers<[1], [0], [0], [1], [0, 0, 1, 1], [], []>} : vector<8x128xbf16>, vector<128x512xbf16>, vector<8x512xf32> -> vector<8x512xf32>
    %94 = arith.addf %91, %93 : vector<8x512xf32>
    %95 = vector.extract_strided_slice %94 {offsets = [0, 0], sizes = [8, 128], strides = [1, 1]} : vector<8x512xf32> to vector<8x128xf32>
    %96 = arith.negf %95 : vector<8x128xf32>
    %97 = math.exp %96 : vector<8x128xf32>
    %cst_37 = arith.constant 1.000000e+00 : f32
    %98 = vector.broadcast %cst_37 : f32 to vector<8x128xf32>
    %99 = arith.addf %98, %97 : vector<8x128xf32>
    %100 = arith.divf %98, %99 : vector<8x128xf32>
    %101 = vector.extract_strided_slice %94 {offsets = [0, 128], sizes = [8, 128], strides = [1, 1]} : vector<8x512xf32> to vector<8x128xf32>
    %102 = arith.negf %101 : vector<8x128xf32>
    %103 = math.exp %102 : vector<8x128xf32>
    %cst_38 = arith.constant 1.000000e+00 : f32
    %104 = vector.broadcast %cst_38 : f32 to vector<8x128xf32>
    %105 = arith.addf %104, %103 : vector<8x128xf32>
    %106 = arith.divf %104, %105 : vector<8x128xf32>
    %107 = vector.extract_strided_slice %94 {offsets = [0, 256], sizes = [8, 128], strides = [1, 1]} : vector<8x512xf32> to vector<8x128xf32>
    %108 = math.tanh %107 : vector<8x128xf32>
    %109 = vector.extract_strided_slice %94 {offsets = [0, 384], sizes = [8, 128], strides = [1, 1]} : vector<8x512xf32> to vector<8x128xf32>
    %110 = arith.negf %109 : vector<8x128xf32>
    %111 = math.exp %110 : vector<8x128xf32>
    %cst_39 = arith.constant 1.000000e+00 : f32
    %112 = vector.broadcast %cst_39 : f32 to vector<8x128xf32>
    %113 = arith.addf %112, %111 : vector<8x128xf32>
    %114 = arith.divf %112, %113 : vector<8x128xf32>
    %115 = arith.mulf %106, %82 : vector<8x128xf32>
    %116 = arith.mulf %100, %108 : vector<8x128xf32>
    %117 = arith.addf %115, %116 : vector<8x128xf32>
    %118 = math.tanh %117 : vector<8x128xf32>
    %119 = arith.mulf %114, %118 : vector<8x128xf32>
    %120 = arith.index_cast %c2_i32 : i32 to index
    %c0_40 = arith.constant 0 : index
    %c0_41 = arith.constant 0 : index
    %121 = vector.load %arg7[%120, %c0_40, %c0_41] : memref<8x8x128xf32, #tpu.memory_space<vmem>>, vector<1x8x128xf32>
    %122 = vector.shape_cast %121 : vector<1x8x128xf32> to vector<8x128xf32>
    %123 = vector.shape_cast %119 : vector<8x128xf32> to vector<1x8x128xf32>
    tpu.vector_store %arg7[%120, %c0_40, %c0_41], %123 {strides = array<i32>} : memref<8x8x128xf32, #tpu.memory_space<vmem>>, vector<1x8x128xf32>,
    %c3_i32 = arith.constant 3 : i32
    %124 = arith.index_cast %c3_i32 : i32 to index
    %c0_42 = arith.constant 0 : index
    %c0_43 = arith.constant 0 : index
    %125 = vector.load %arg8[%124, %c0_42, %c0_43] : memref<8x8x512xf32, #tpu.memory_space<vmem>>, vector<1x8x512xf32>
    %126 = vector.shape_cast %125 : vector<1x8x512xf32> to vector<8x512xf32>
    %127 = arith.truncf %119 : vector<8x128xf32> to vector<8x128xbf16>
    %cst_44 = arith.constant dense<0.000000e+00> : vector<8x512xf32>
    %128 = tpu.matmul %127, %16, %cst_44 {dimension_numbers = #tpu.dot_dimension_numbers<[1], [0], [0], [1], [0, 0, 1, 1], [], []>} : vector<8x128xbf16>, vector<128x512xbf16>, vector<8x512xf32> -> vector<8x512xf32>
    %129 = arith.addf %126, %128 : vector<8x512xf32>
    %130 = vector.extract_strided_slice %129 {offsets = [0, 0], sizes = [8, 128], strides = [1, 1]} : vector<8x512xf32> to vector<8x128xf32>
    %131 = arith.negf %130 : vector<8x128xf32>
    %132 = math.exp %131 : vector<8x128xf32>
    %cst_45 = arith.constant 1.000000e+00 : f32
    %133 = vector.broadcast %cst_45 : f32 to vector<8x128xf32>
    %134 = arith.addf %133, %132 : vector<8x128xf32>
    %135 = arith.divf %133, %134 : vector<8x128xf32>
    %136 = vector.extract_strided_slice %129 {offsets = [0, 128], sizes = [8, 128], strides = [1, 1]} : vector<8x512xf32> to vector<8x128xf32>
    %137 = arith.negf %136 : vector<8x128xf32>
    %138 = math.exp %137 : vector<8x128xf32>
    %cst_46 = arith.constant 1.000000e+00 : f32
    %139 = vector.broadcast %cst_46 : f32 to vector<8x128xf32>
    %140 = arith.addf %139, %138 : vector<8x128xf32>
    %141 = arith.divf %139, %140 : vector<8x128xf32>
    %142 = vector.extract_strided_slice %129 {offsets = [0, 256], sizes = [8, 128], strides = [1, 1]} : vector<8x512xf32> to vector<8x128xf32>
    %143 = math.tanh %142 : vector<8x128xf32>
    %144 = vector.extract_strided_slice %129 {offsets = [0, 384], sizes = [8, 128], strides = [1, 1]} : vector<8x512xf32> to vector<8x128xf32>
    %145 = arith.negf %144 : vector<8x128xf32>
    %146 = math.exp %145 : vector<8x128xf32>
    %cst_47 = arith.constant 1.000000e+00 : f32
    %147 = vector.broadcast %cst_47 : f32 to vector<8x128xf32>
    %148 = arith.addf %147, %146 : vector<8x128xf32>
    %149 = arith.divf %147, %148 : vector<8x128xf32>
    %150 = arith.mulf %141, %117 : vector<8x128xf32>
    %151 = arith.mulf %135, %143 : vector<8x128xf32>
    %152 = arith.addf %150, %151 : vector<8x128xf32>
    %153 = math.tanh %152 : vector<8x128xf32>
    %154 = arith.mulf %149, %153 : vector<8x128xf32>
    %155 = arith.index_cast %c3_i32 : i32 to index
    %c0_48 = arith.constant 0 : index
    %c0_49 = arith.constant 0 : index
    %156 = vector.load %arg7[%155, %c0_48, %c0_49] : memref<8x8x128xf32, #tpu.memory_space<vmem>>, vector<1x8x128xf32>
    %157 = vector.shape_cast %156 : vector<1x8x128xf32> to vector<8x128xf32>
    %158 = vector.shape_cast %154 : vector<8x128xf32> to vector<1x8x128xf32>
    tpu.vector_store %arg7[%155, %c0_48, %c0_49], %158 {strides = array<i32>} : memref<8x8x128xf32, #tpu.memory_space<vmem>>, vector<1x8x128xf32>,
    %c4_i32 = arith.constant 4 : i32
    %159 = arith.index_cast %c4_i32 : i32 to index
    %c0_50 = arith.constant 0 : index
    %c0_51 = arith.constant 0 : index
    %160 = vector.load %arg8[%159, %c0_50, %c0_51] : memref<8x8x512xf32, #tpu.memory_space<vmem>>, vector<1x8x512xf32>
    %161 = vector.shape_cast %160 : vector<1x8x512xf32> to vector<8x512xf32>
    %162 = arith.truncf %154 : vector<8x128xf32> to vector<8x128xbf16>
    %cst_52 = arith.constant dense<0.000000e+00> : vector<8x512xf32>
    %163 = tpu.matmul %162, %16, %cst_52 {dimension_numbers = #tpu.dot_dimension_numbers<[1], [0], [0], [1], [0, 0, 1, 1], [], []>} : vector<8x128xbf16>, vector<128x512xbf16>, vector<8x512xf32> -> vector<8x512xf32>
    %164 = arith.addf %161, %163 : vector<8x512xf32>
    %165 = vector.extract_strided_slice %164 {offsets = [0, 0], sizes = [8, 128], strides = [1, 1]} : vector<8x512xf32> to vector<8x128xf32>
    %166 = arith.negf %165 : vector<8x128xf32>
    %167 = math.exp %166 : vector<8x128xf32>
    %cst_53 = arith.constant 1.000000e+00 : f32
    %168 = vector.broadcast %cst_53 : f32 to vector<8x128xf32>
    %169 = arith.addf %168, %167 : vector<8x128xf32>
    %170 = arith.divf %168, %169 : vector<8x128xf32>
    %171 = vector.extract_strided_slice %164 {offsets = [0, 128], sizes = [8, 128], strides = [1, 1]} : vector<8x512xf32> to vector<8x128xf32>
    %172 = arith.negf %171 : vector<8x128xf32>
    %173 = math.exp %172 : vector<8x128xf32>
    %cst_54 = arith.constant 1.000000e+00 : f32
    %174 = vector.broadcast %cst_54 : f32 to vector<8x128xf32>
    %175 = arith.addf %174, %173 : vector<8x128xf32>
    %176 = arith.divf %174, %175 : vector<8x128xf32>
    %177 = vector.extract_strided_slice %164 {offsets = [0, 256], sizes = [8, 128], strides = [1, 1]} : vector<8x512xf32> to vector<8x128xf32>
    %178 = math.tanh %177 : vector<8x128xf32>
    %179 = vector.extract_strided_slice %164 {offsets = [0, 384], sizes = [8, 128], strides = [1, 1]} : vector<8x512xf32> to vector<8x128xf32>
    %180 = arith.negf %179 : vector<8x128xf32>
    %181 = math.exp %180 : vector<8x128xf32>
    %cst_55 = arith.constant 1.000000e+00 : f32
    %182 = vector.broadcast %cst_55 : f32 to vector<8x128xf32>
    %183 = arith.addf %182, %181 : vector<8x128xf32>
    %184 = arith.divf %182, %183 : vector<8x128xf32>
    %185 = arith.mulf %176, %152 : vector<8x128xf32>
    %186 = arith.mulf %170, %178 : vector<8x128xf32>
    %187 = arith.addf %185, %186 : vector<8x128xf32>
    %188 = math.tanh %187 : vector<8x128xf32>
    %189 = arith.mulf %184, %188 : vector<8x128xf32>
    %190 = arith.index_cast %c4_i32 : i32 to index
    %c0_56 = arith.constant 0 : index
    %c0_57 = arith.constant 0 : index
    %191 = vector.load %arg7[%190, %c0_56, %c0_57] : memref<8x8x128xf32, #tpu.memory_space<vmem>>, vector<1x8x128xf32>
    %192 = vector.shape_cast %191 : vector<1x8x128xf32> to vector<8x128xf32>
    %193 = vector.shape_cast %189 : vector<8x128xf32> to vector<1x8x128xf32>
    tpu.vector_store %arg7[%190, %c0_56, %c0_57], %193 {strides = array<i32>} : memref<8x8x128xf32, #tpu.memory_space<vmem>>, vector<1x8x128xf32>,
    %c5_i32 = arith.constant 5 : i32
    %194 = arith.index_cast %c5_i32 : i32 to index
    %c0_58 = arith.constant 0 : index
    %c0_59 = arith.constant 0 : index
    %195 = vector.load %arg8[%194, %c0_58, %c0_59] : memref<8x8x512xf32, #tpu.memory_space<vmem>>, vector<1x8x512xf32>
    %196 = vector.shape_cast %195 : vector<1x8x512xf32> to vector<8x512xf32>
    %197 = arith.truncf %189 : vector<8x128xf32> to vector<8x128xbf16>
    %cst_60 = arith.constant dense<0.000000e+00> : vector<8x512xf32>
    %198 = tpu.matmul %197, %16, %cst_60 {dimension_numbers = #tpu.dot_dimension_numbers<[1], [0], [0], [1], [0, 0, 1, 1], [], []>} : vector<8x128xbf16>, vector<128x512xbf16>, vector<8x512xf32> -> vector<8x512xf32>
    %199 = arith.addf %196, %198 : vector<8x512xf32>
    %200 = vector.extract_strided_slice %199 {offsets = [0, 0], sizes = [8, 128], strides = [1, 1]} : vector<8x512xf32> to vector<8x128xf32>
    %201 = arith.negf %200 : vector<8x128xf32>
    %202 = math.exp %201 : vector<8x128xf32>
    %cst_61 = arith.constant 1.000000e+00 : f32
    %203 = vector.broadcast %cst_61 : f32 to vector<8x128xf32>
    %204 = arith.addf %203, %202 : vector<8x128xf32>
    %205 = arith.divf %203, %204 : vector<8x128xf32>
    %206 = vector.extract_strided_slice %199 {offsets = [0, 128], sizes = [8, 128], strides = [1, 1]} : vector<8x512xf32> to vector<8x128xf32>
    %207 = arith.negf %206 : vector<8x128xf32>
    %208 = math.exp %207 : vector<8x128xf32>
    %cst_62 = arith.constant 1.000000e+00 : f32
    %209 = vector.broadcast %cst_62 : f32 to vector<8x128xf32>
    %210 = arith.addf %209, %208 : vector<8x128xf32>
    %211 = arith.divf %209, %210 : vector<8x128xf32>
    %212 = vector.extract_strided_slice %199 {offsets = [0, 256], sizes = [8, 128], strides = [1, 1]} : vector<8x512xf32> to vector<8x128xf32>
    %213 = math.tanh %212 : vector<8x128xf32>
    %214 = vector.extract_strided_slice %199 {offsets = [0, 384], sizes = [8, 128], strides = [1, 1]} : vector<8x512xf32> to vector<8x128xf32>
    %215 = arith.negf %214 : vector<8x128xf32>
    %216 = math.exp %215 : vector<8x128xf32>
    %cst_63 = arith.constant 1.000000e+00 : f32
    %217 = vector.broadcast %cst_63 : f32 to vector<8x128xf32>
    %218 = arith.addf %217, %216 : vector<8x128xf32>
    %219 = arith.divf %217, %218 : vector<8x128xf32>
    %220 = arith.mulf %211, %187 : vector<8x128xf32>
    %221 = arith.mulf %205, %213 : vector<8x128xf32>
    %222 = arith.addf %220, %221 : vector<8x128xf32>
    %223 = math.tanh %222 : vector<8x128xf32>
    %224 = arith.mulf %219, %223 : vector<8x128xf32>
    %225 = arith.index_cast %c5_i32 : i32 to index
    %c0_64 = arith.constant 0 : index
    %c0_65 = arith.constant 0 : index
    %226 = vector.load %arg7[%225, %c0_64, %c0_65] : memref<8x8x128xf32, #tpu.memory_space<vmem>>, vector<1x8x128xf32>
    %227 = vector.shape_cast %226 : vector<1x8x128xf32> to vector<8x128xf32>
    %228 = vector.shape_cast %224 : vector<8x128xf32> to vector<1x8x128xf32>
    tpu.vector_store %arg7[%225, %c0_64, %c0_65], %228 {strides = array<i32>} : memref<8x8x128xf32, #tpu.memory_space<vmem>>, vector<1x8x128xf32>,
    %c6_i32 = arith.constant 6 : i32
    %229 = arith.index_cast %c6_i32 : i32 to index
    %c0_66 = arith.constant 0 : index
    %c0_67 = arith.constant 0 : index
    %230 = vector.load %arg8[%229, %c0_66, %c0_67] : memref<8x8x512xf32, #tpu.memory_space<vmem>>, vector<1x8x512xf32>
    %231 = vector.shape_cast %230 : vector<1x8x512xf32> to vector<8x512xf32>
    %232 = arith.truncf %224 : vector<8x128xf32> to vector<8x128xbf16>
    %cst_68 = arith.constant dense<0.000000e+00> : vector<8x512xf32>
    %233 = tpu.matmul %232, %16, %cst_68 {dimension_numbers = #tpu.dot_dimension_numbers<[1], [0], [0], [1], [0, 0, 1, 1], [], []>} : vector<8x128xbf16>, vector<128x512xbf16>, vector<8x512xf32> -> vector<8x512xf32>
    %234 = arith.addf %231, %233 : vector<8x512xf32>
    %235 = vector.extract_strided_slice %234 {offsets = [0, 0], sizes = [8, 128], strides = [1, 1]} : vector<8x512xf32> to vector<8x128xf32>
    %236 = arith.negf %235 : vector<8x128xf32>
    %237 = math.exp %236 : vector<8x128xf32>
    %cst_69 = arith.constant 1.000000e+00 : f32
    %238 = vector.broadcast %cst_69 : f32 to vector<8x128xf32>
    %239 = arith.addf %238, %237 : vector<8x128xf32>
    %240 = arith.divf %238, %239 : vector<8x128xf32>
    %241 = vector.extract_strided_slice %234 {offsets = [0, 128], sizes = [8, 128], strides = [1, 1]} : vector<8x512xf32> to vector<8x128xf32>
    %242 = arith.negf %241 : vector<8x128xf32>
    %243 = math.exp %242 : vector<8x128xf32>
    %cst_70 = arith.constant 1.000000e+00 : f32
    %244 = vector.broadcast %cst_70 : f32 to vector<8x128xf32>
    %245 = arith.addf %244, %243 : vector<8x128xf32>
    %246 = arith.divf %244, %245 : vector<8x128xf32>
    %247 = vector.extract_strided_slice %234 {offsets = [0, 256], sizes = [8, 128], strides = [1, 1]} : vector<8x512xf32> to vector<8x128xf32>
    %248 = math.tanh %247 : vector<8x128xf32>
    %249 = vector.extract_strided_slice %234 {offsets = [0, 384], sizes = [8, 128], strides = [1, 1]} : vector<8x512xf32> to vector<8x128xf32>
    %250 = arith.negf %249 : vector<8x128xf32>
    %251 = math.exp %250 : vector<8x128xf32>
    %cst_71 = arith.constant 1.000000e+00 : f32
    %252 = vector.broadcast %cst_71 : f32 to vector<8x128xf32>
    %253 = arith.addf %252, %251 : vector<8x128xf32>
    %254 = arith.divf %252, %253 : vector<8x128xf32>
    %255 = arith.mulf %246, %222 : vector<8x128xf32>
    %256 = arith.mulf %240, %248 : vector<8x128xf32>
    %257 = arith.addf %255, %256 : vector<8x128xf32>
    %258 = math.tanh %257 : vector<8x128xf32>
    %259 = arith.mulf %254, %258 : vector<8x128xf32>
    %260 = arith.index_cast %c6_i32 : i32 to index
    %c0_72 = arith.constant 0 : index
    %c0_73 = arith.constant 0 : index
    %261 = vector.load %arg7[%260, %c0_72, %c0_73] : memref<8x8x128xf32, #tpu.memory_space<vmem>>, vector<1x8x128xf32>
    %262 = vector.shape_cast %261 : vector<1x8x128xf32> to vector<8x128xf32>
    %263 = vector.shape_cast %259 : vector<8x128xf32> to vector<1x8x128xf32>
    tpu.vector_store %arg7[%260, %c0_72, %c0_73], %263 {strides = array<i32>} : memref<8x8x128xf32, #tpu.memory_space<vmem>>, vector<1x8x128xf32>,
    %c7_i32 = arith.constant 7 : i32
    %264 = arith.index_cast %c7_i32 : i32 to index
    %c0_74 = arith.constant 0 : index
    %c0_75 = arith.constant 0 : index
    %265 = vector.load %arg8[%264, %c0_74, %c0_75] : memref<8x8x512xf32, #tpu.memory_space<vmem>>, vector<1x8x512xf32>
    %266 = vector.shape_cast %265 : vector<1x8x512xf32> to vector<8x512xf32>
    %267 = arith.truncf %259 : vector<8x128xf32> to vector<8x128xbf16>
    %cst_76 = arith.constant dense<0.000000e+00> : vector<8x512xf32>
    %268 = tpu.matmul %267, %16, %cst_76 {dimension_numbers = #tpu.dot_dimension_numbers<[1], [0], [0], [1], [0, 0, 1, 1], [], []>} : vector<8x128xbf16>, vector<128x512xbf16>, vector<8x512xf32> -> vector<8x512xf32>
    %269 = arith.addf %266, %268 : vector<8x512xf32>
    %270 = vector.extract_strided_slice %269 {offsets = [0, 0], sizes = [8, 128], strides = [1, 1]} : vector<8x512xf32> to vector<8x128xf32>
    %271 = arith.negf %270 : vector<8x128xf32>
    %272 = math.exp %271 : vector<8x128xf32>
    %cst_77 = arith.constant 1.000000e+00 : f32
    %273 = vector.broadcast %cst_77 : f32 to vector<8x128xf32>
    %274 = arith.addf %273, %272 : vector<8x128xf32>
    %275 = arith.divf %273, %274 : vector<8x128xf32>
    %276 = vector.extract_strided_slice %269 {offsets = [0, 128], sizes = [8, 128], strides = [1, 1]} : vector<8x512xf32> to vector<8x128xf32>
    %277 = arith.negf %276 : vector<8x128xf32>
    %278 = math.exp %277 : vector<8x128xf32>
    %cst_78 = arith.constant 1.000000e+00 : f32
    %279 = vector.broadcast %cst_78 : f32 to vector<8x128xf32>
    %280 = arith.addf %279, %278 : vector<8x128xf32>
    %281 = arith.divf %279, %280 : vector<8x128xf32>
    %282 = vector.extract_strided_slice %269 {offsets = [0, 256], sizes = [8, 128], strides = [1, 1]} : vector<8x512xf32> to vector<8x128xf32>
    %283 = math.tanh %282 : vector<8x128xf32>
    %284 = vector.extract_strided_slice %269 {offsets = [0, 384], sizes = [8, 128], strides = [1, 1]} : vector<8x512xf32> to vector<8x128xf32>
    %285 = arith.negf %284 : vector<8x128xf32>
    %286 = math.exp %285 : vector<8x128xf32>
    %cst_79 = arith.constant 1.000000e+00 : f32
    %287 = vector.broadcast %cst_79 : f32 to vector<8x128xf32>
    %288 = arith.addf %287, %286 : vector<8x128xf32>
    %289 = arith.divf %287, %288 : vector<8x128xf32>
    %290 = arith.mulf %281, %257 : vector<8x128xf32>
    %291 = arith.mulf %275, %283 : vector<8x128xf32>
    %292 = arith.addf %290, %291 : vector<8x128xf32>
    %293 = math.tanh %292 : vector<8x128xf32>
    %294 = arith.mulf %289, %293 : vector<8x128xf32>
    %295 = arith.index_cast %c7_i32 : i32 to index
    %c0_80 = arith.constant 0 : index
    %c0_81 = arith.constant 0 : index
    %296 = vector.load %arg7[%295, %c0_80, %c0_81] : memref<8x8x128xf32, #tpu.memory_space<vmem>>, vector<1x8x128xf32>
    %297 = vector.shape_cast %296 : vector<1x8x128xf32> to vector<8x128xf32>
    %298 = vector.shape_cast %294 : vector<8x128xf32> to vector<1x8x128xf32>
    tpu.vector_store %arg7[%295, %c0_80, %c0_81], %298 {strides = array<i32>} : memref<8x8x128xf32, #tpu.memory_space<vmem>>, vector<1x8x128xf32>,
    %c8_i32 = arith.constant 8 : i32
    %c0_82 = arith.constant 0 : index
    %c0_83 = arith.constant 0 : index
    %c0_84 = arith.constant 0 : index
    %299 = vector.load %arg5[%c0_82, %c0_83, %c0_84] : memref<1x8x128xf32, #tpu.memory_space<vmem>>, vector<1x8x128xf32>
    %300 = vector.shape_cast %299 : vector<1x8x128xf32> to vector<8x128xf32>
    %301 = vector.shape_cast %294 : vector<8x128xf32> to vector<1x8x128xf32>
    tpu.vector_store %arg5[%c0_82, %c0_83, %c0_84], %301 {strides = array<i32>} : memref<1x8x128xf32, #tpu.memory_space<vmem>>, vector<1x8x128xf32>,
    %c0_85 = arith.constant 0 : index
    %c0_86 = arith.constant 0 : index
    %c0_87 = arith.constant 0 : index
    %302 = vector.load %arg6[%c0_85, %c0_86, %c0_87] : memref<1x8x128xf32, #tpu.memory_space<vmem>>, vector<1x8x128xf32>
    %303 = vector.shape_cast %302 : vector<1x8x128xf32> to vector<8x128xf32>
    %304 = vector.shape_cast %292 : vector<8x128xf32> to vector<1x8x128xf32>
    tpu.vector_store %arg6[%c0_85, %c0_86, %c0_87], %304 {strides = array<i32>} : memref<1x8x128xf32, #tpu.memory_space<vmem>>, vector<1x8x128xf32>,
    return
  }
  func.func @transform_0(%arg0: i32) -> (i32, i32, i32) {
    %c0_i32 = arith.constant 0 : i32
    %c0_i32_0 = arith.constant 0 : i32
    %c0_i32_1 = arith.constant 0 : i32
    %c0_i32_2 = arith.constant 0 : i32
    return %c0_i32, %c0_i32_0, %c0_i32_1 : i32, i32, i32
  }
  func.func @transform_1(%arg0: i32) -> (i32, i32, i32) {
    %c0_i32 = arith.constant 0 : i32
    %c0_i32_0 = arith.constant 0 : i32
    %c0_i32_1 = arith.constant 0 : i32
    return %arg0, %c0_i32, %c0_i32_0 : i32, i32, i32
  }
  func.func @transform_2(%arg0: i32) -> (i32, i32, i32) {
    %c0_i32 = arith.constant 0 : i32
    %c0_i32_0 = arith.constant 0 : i32
    %c0_i32_1 = arith.constant 0 : i32
    return %arg0, %c0_i32, %c0_i32_0 : i32, i32, i32
  }
  func.func @transform_3(%arg0: i32) -> (i32, i32, i32) {
    %c0_i32 = arith.constant 0 : i32
    %c0_i32_0 = arith.constant 0 : i32
    %c0_i32_1 = arith.constant 0 : i32
    return %arg0, %c0_i32, %c0_i32_0 : i32, i32, i32
  }
  func.func @transform_4(%arg0: i32) -> (i32, i32, i32) {
    %c0_i32 = arith.constant 0 : i32
    %c0_i32_0 = arith.constant 0 : i32
    %c0_i32_1 = arith.constant 0 : i32
    return %arg0, %c0_i32, %c0_i32_0 : i32, i32, i32
  }
  func.func @transform_5(%arg0: i32) -> (i32, i32, i32) {
    %c0_i32 = arith.constant 0 : i32
    %c0_i32_0 = arith.constant 0 : i32
    %c0_i32_1 = arith.constant 0 : i32
    return %arg0, %c0_i32, %c0_i32_0 : i32, i32, i32
  }
}

</mosaic_0001>

<bundles_post_ra>
// kernel: tpu_custom_call.1
= control target key start
LH: loop header
LB: loop body
LE: loop exit
PB: predicated region body
PF: predicated region fallthrough
CT: control target
= control target key end

     0   :  { %s3739_s0 = inlined_call_operand.hbm [shape: f32[8,8,128], index: 0, kind: input, shape index: {}]   ;;  %s3740_s1 = inlined_call_operand.hbm [shape: bf16[2,128,512], index: 1, kind: input, shape index: {}]   ;;  %s3741_s2 = inlined_call_operand.hbm [shape: bf16[2,128,512], index: 2, kind: input, shape index: {}]   ;;  %s3742_s3 = inlined_call_operand.hbm [shape: f32[2,1,512], index: 3, kind: input, shape index: {}]   ;;  %s3743_s4 = inlined_call_operand.hbm [shape: f32[2,8,128], index: 4, kind: output, shape index: {0}]   ;;  %s3744_s5 = inlined_call_operand.hbm [shape: f32[2,8,128], index: 5, kind: output, shape index: {1}]  }
   0x1   :  { %3759 = sst [smem:[#allocation43_spill]] %s3740_s1 }
   0x2   :  { %3760 = sst [smem:[#allocation44_spill]] %s3741_s2 }
   0x3   :  { %11 = vsyncpa [#allocation5], 0 }
   0x4   :  { %12 = vsyncpa [#allocation8], 0 }
   0x5   :  { %14 = vsyncpa [#allocation8 + $0x1], 0 }
   0x6   :  { %15 = vsyncpa [#allocation11], 0 }
   0x7   :  { %17 = vsyncpa [#allocation11 + $0x1], 0 }
   0x8   :  { %18 = vsyncpa [#allocation6], 0 }
   0x9   :  { %20 = vsyncpa [#allocation6 + $0x1], 0 }
   0xa   :  { %21 = vsyncpa [#allocation14], 0 }
   0xb   :  { %23 = vsyncpa [#allocation14 + $0x1], 0  ;;  %s2799_s18 = smov 0   ;;  %s2801_s19 = smov 0  }
   0xc   :  { %s2803_s20 = smov 0   ;;  %s2805_s21 = smov 0  }
   0xd LB: > { %3761 = sst [smem:[#allocation20_spill]] %s2752_s20  ;;  %s2820_s22 = sadd.s32 1, %s2756_s21   ;;  %s2756_s21 = sphi %s2805_s21, %s3828_s21   ;;  %s2752_s20 = sphi %s2803_s20, %s3830_s20   ;;  %s2748_s19 = sphi %s2801_s19, %s3832_s19   ;;  %s2744_s18 = sphi %s2799_s18, %s3831_s18  }
   0xe   : > { %3762 = sst [smem:[#allocation21_spill]] %s2756_s21  ;;  %s57_s23 = sadd.s32 1, %s2752_s20 }
   0xf   : > { %3763 = sst [smem:[#allocation22_spill]] %s2820_s22  ;;  %s54_s24 = ssub.s32 %s2756_s21, %s2820_s22 }
  0x10   : > { %p3745_p0 = scmp.ne.s32.totalorder %s2752_s20, %s2748_s19  ;;  %p55_p1 = scmp.eq.s32.totalorder %s54_s24, 0 }
  0x11   : > { %p65_p2 = scmp.eq.s32.totalorder %s2756_s21, 0  ;;  %p2247_p4 = scmp.lt.s32.totalorder %s2756_s21, 2 }
  0x12   : > { %s2831_s25 = scalar_select %p55_p1, %s2752_s20, %s57_s23  }
  0x13   : > { %p66_p5 = por %p65_p2, %p3745_p0  ;;  %s211_s26 = sand.u32 1, %s2756_s21  }
  0x14   : > { %3764 = sst [smem:[#allocation23_spill]] %s2831_s25  ;;  %s2838_s27 = sand.u32 1, %s2752_s20  }
  0x15   : > { %s2097_s28 = sshll.u32 %s2838_s27, 8  ;;  %s2208_s29 = sshll.u32 %s2756_s21, 12 }
  0x16   : > { %s3765_s1 = sld [smem:[#allocation43_spill]]  ;;  %s215_s8 = scalar_lea.vmem [#allocation7], %s2097_s28 }
  0x17   : > { %s222_s9 = sshll.u32 %s215_s8, 4  ;;  %p2851_p6 = pnand %p2247_p4, %p66_p5  ;;  %s2855_s9 = int_to_ptr.vmem [resolvable:$true] %s222_s9 }
  0x18   : > { %s2857_s11 = scalar_lea.sflag [#allocation8], %s211_s26 }
  0x19   : > { %p2863_p8 = pneg %p2851_p6 }
  0x1c   : > { %s2847_s7 = scalar_lea.hbm %s3765_s1, %s2208_s29  ;;  %s2549_s16 = scalar_lea.hbm %s3765_s1, 8192 }
  0x1d   : > { %s2544_s12 = scalar_lea.hbm %s2847_s7, 4096  ;;  %p2550_p11 = scmp.lt.s32.totalorder %s2847_s7, %s3765_s1 }
  0x1e   : > { %p2545_p7 = scmp.ne.s32.totalorder %s2847_s7, %s2544_s12  ;;  %p2551_p12 = scmp.lt.s32.totalorder %s2549_s16, %s2544_s12 }
  0x20   : > { %p2547_p9 = pnand %p2863_p8, %p2545_p7  ;;  %p2552_p13 = por %p2551_p12, %p2550_p11 }
  0x22   : > { %p2548_p10 = pneg %p2547_p9 }
  0x24   : > { %p2553_p1 = pnand %p2552_p13, %p2548_p10 }
  0x26   : > { %2556 = shalt.err (!%p2553_p1)
}
  0x27   : > { %s2557_s24 = scalar_lea.vmem %s2855_s9, 4096  ;;  %s2758_s26 = smov [#allocation7]  }
  0x28   : > { %p2558_p2 = scmp.ne.s32.totalorder %s2855_s9, %s2557_s24  ;;  %s2562_s30 = sshll.u32 %s2758_s26, 4  ;;  %s2563_s30 = int_to_ptr.vmem [resolvable:$false] %s2562_s30 }
  0x29   : > { %s2564_s6 = scalar_lea.vmem %s2563_s30, 8192  ;;  %p2565_p7 = scmp.lt.s32.totalorder %s2855_s9, %s2563_s30 }
  0x2a   : > { %p2560_p4 = pnand %p2558_p2, %p2863_p8  ;;  %p2566_p9 = scmp.lt.s32.totalorder %s2564_s6, %s2557_s24 }
  0x2c   : > { %p2561_p5 = pneg %p2560_p4  ;;  %p2567_p3 = por %p2566_p9, %p2565_p7 }
  0x2e   : > { %p2568_p0 = pnand %p2567_p3, %p2561_p5 }
  0x30   : > { %2571 = shalt.err (!%p2568_p0)
}
  0x31   : > { %s3746_s8 = smov 256   ;;  %s3747_s12 = smov 16  }
  0x32   : > { %2232 = dma.hbm_to_vmem [thread:$0]  (!%p2851_p6), %s2847_s7, 4096, %s2855_s9, %s2857_s11, %s3746_s8, %s3746_s8, %s3747_s12  }
  0x33   : > { %s3768_s2 = sld [smem:[#allocation44_spill]]  ;;  %s236_s17 = scalar_lea.vmem [#allocation9], %s2097_s28 }
  0x34   : > { %s243_s23 = sshll.u32 %s236_s17, 4  ;;  %s2901_s24 = sadd.s32 4294967295, %s2756_s21   ;;  %s2898_s23 = int_to_ptr.vmem [resolvable:$true] %s243_s23 }
  0x35   : > { %s2093_s26 = sadd.s32 4294967294, %s2756_s21   ;;  %p70_p0 = scmp.ne.s32.totalorder %s2748_s19, %s2744_s18 }
  0x36   : > { %p3748_p3 = scmp.eq.s32.totalorder %s2901_s24, 0  ;;  %p146_p10 = scmp.eq.s32.totalorder %s2901_s24, 1 }
  0x37   : > { %p152_p11 = scmp.eq.s32.totalorder %s2093_s26, 1  ;;  %p2094_p13 = scmp.ge.s32.totalorder %s2756_s21, 1 }
  0x38   : > { %p2910_p12 = por %p3748_p3, %p70_p0  ;;  %p3770_p1 = scmp.ne.s32.totalorder %s2752_s20, %s2748_s19 }
  0x39   : > { %s2894_s16 = scalar_lea.hbm %s3768_s2, %s2208_s29  ;;  %p2922_p4 = por %p152_p11, %p70_p0 }
  0x3a   : > { %s3769_s28 = scalar_select %p2910_p12, 1, 0 }
  0x3b   : > { %p2918_p2 = por %p146_p10, %p3770_p1  ;;  %p185_p5 = scmp.lt.s32.totalorder %s2756_s21, 3 }
  0x3c   : > { %s3772_s7 = scalar_select %p2922_p4, 1, 0 }
  0x3d   : > { %s3771_s29 = scalar_select %p2918_p2, 1, 0 }
  0x3e   : > { %p2928_p9 = pnand %p2094_p13, %p185_p5  ;;  %s2761_s30 = smov [#allocation4]  }
  0x3f   : > { %s197_s6 = sshll.u32 %s2761_s30, 4  ;;  %s2572_s14 = scalar_lea.hbm %s2894_s16, 4096  ;;  %s2932_s6 = int_to_ptr.vmem [resolvable:$true] %s197_s6 }
  0x40   : > { %s3773_s9 = scalar_select %p2928_p9, 1, 0 }
  0x41   : > { %p2573_p1 = scmp.ne.s32.totalorder %s2894_s16, %s2572_s14  ;;  %s2577_s26 = scalar_lea.hbm %s3768_s2, 8192 }
  0x42   : > { %p2578_p13 = scmp.lt.s32.totalorder %s2894_s16, %s3768_s2  ;;  %p2579_p5 = scmp.lt.s32.totalorder %s2577_s26, %s2572_s14 }
  0x43   : > { %p2575_p0 = pnand %p2573_p1, %p2863_p8 }
  0x44   : > { %p2580_p7 = por %p2579_p5, %p2578_p13 }
  0x45   : > { %p2576_p11 = pneg %p2575_p0 }
  0x47   : > { %p2581_p3 = pnand %p2580_p7, %p2576_p11 }
  0x49   : > { %2584 = shalt.err (!%p2581_p3)
}
  0x4a   : > { %s2585_s30 = scalar_lea.vmem %s2898_s23, 4096  ;;  %s2762_s1 = smov [#allocation9]  }
  0x4b   : > { %p2586_p10 = scmp.ne.s32.totalorder %s2898_s23, %s2585_s30  ;;  %s2590_s15 = sshll.u32 %s2762_s1, 4  ;;  %s2591_s15 = int_to_ptr.vmem [resolvable:$false] %s2590_s15 }
  0x4c   : > { %s2592_s17 = scalar_lea.vmem %s2591_s15, 8192  ;;  %p2593_p4 = scmp.lt.s32.totalorder %s2898_s23, %s2591_s15 }
  0x4d   : > { %p2588_p1 = pnand %p2586_p10, %p2863_p8  ;;  %p2594_p2 = scmp.lt.s32.totalorder %s2592_s17, %s2585_s30 }
  0x4f   : > { %p2589_p0 = pneg %p2588_p1  ;;  %p2595_p12 = por %p2594_p2, %p2593_p4 }
  0x51   : > { %p2596_p9 = pnand %p2595_p12, %p2589_p0 }
  0x53   : > { %2599 = shalt.err (!%p2596_p9)
}
  0x54   : > { %s3774_s8 = smov 16   ;;  %s3775_s12 = smov 256  }
  0x55   : > { %2235 = dma.hbm_to_vmem [thread:$0]  (!%p2851_p6), %s2894_s16, 4096, %s2898_s23, %s2857_s11, %s3775_s12, %s3775_s12, %s3774_s8  }
  0x56   : > { %p3776_p3 = scmp.eq.s32.totalorder %s2901_s24, 0  ;;  %p3777_p2 = scmp.ne.s32.totalorder %s3773_s9, 0 }
  0x57   : > { %s2103_s14 = sshll.u32 %s2838_s27, 2  ;;  %s2210_s26 = sshll.u32 %s2756_s21, 6 }
  0x58   : > { %p3778_p12 = pneg %p3777_p2  ;;  %s2974_s17 = scalar_lea.hbm %s3742_s3, %s2210_s26 }
  0x59   : > { %s2611_s2 = scalar_lea.vmem %s2932_s6, 1024  ;;  %p2619_p13 = scmp.lt.s32.totalorder %s2932_s6, %s2932_s6 }
  0x5a   : > { %p2965_p4 = pnand %p3778_p12, %p3776_p3  ;;  %p2612_p9 = scmp.ne.s32.totalorder %s2932_s6, %s2611_s2 }
  0x5b   : > { %p2620_p5 = scmp.lt.s32.totalorder %s2611_s2, %s2611_s2 }
  0x5c   : > { %p2602_p7 = pneg %p2965_p4 }
  0x5d   : > { %p2621_p1 = por %p2620_p5, %p2619_p13 }
  0x5e   : > { %p2614_p10 = pnand %p2612_p9, %p2602_p7 }
  0x60   : > { %p2615_p11 = pneg %p2614_p10 }
  0x62   : > { %p2622_p0 = pnand %p2621_p1, %p2615_p11 }
  0x64   : > { %2625 = shalt.err (!%p2622_p0)
}
  0x65   : > { %s2763_s11 = smov 128   ;;  %s2764_s16 = smov 8  }
  0x66   : > { %2228 = dma.hbm_to_vmem [thread:$0]  (!%p2965_p4), %s3739_s0, 1024, %s2932_s6, [#allocation5], %s2763_s11, %s2763_s11, %s2764_s16  }
  0x67   : > { %s257_s12 = scalar_lea.vmem [#allocation10], %s2103_s14  ;;  %s254_s2 = scalar_lea.sflag [#allocation11], %s2838_s27 }
  0x68   : > { %s265_s26 = sshll.u32 %s257_s12, 4  ;;  %s2626_s30 = scalar_lea.hbm %s2974_s17, 64  ;;  %s266_s26 = int_to_ptr.vmem [resolvable:$true] %s265_s26 }
  0x69   : > { %p2627_p3 = scmp.ne.s32.totalorder %s2974_s17, %s2626_s30  ;;  %s2631_s20 = scalar_lea.hbm %s3742_s3, 128 }
  0x6a   : > { %p2632_p9 = scmp.lt.s32.totalorder %s2974_s17, %s3742_s3  ;;  %p2633_p10 = scmp.lt.s32.totalorder %s2631_s20, %s2626_s30 }
  0x6b   : > { %p2629_p12 = pnand %p2627_p3, %p2863_p8 }
  0x6c   : > { %p2634_p11 = por %p2633_p10, %p2632_p9 }
  0x6d   : > { %p2630_p7 = pneg %p2629_p12 }
  0x6f   : > { %p2635_p4 = pnand %p2634_p11, %p2630_p7 }
  0x71   : > { %2638 = shalt.err (!%p2635_p4)
}
  0x72   : > { %s2639_s6 = scalar_lea.vmem %s266_s26, 64  ;;  %s2765_s27 = smov [#allocation10]  }
  0x73   : > { %p2640_p13 = scmp.ne.s32.totalorder %s266_s26, %s2639_s6  ;;  %s2644_s1 = sshll.u32 %s2765_s27, 4  ;;  %s2645_s1 = int_to_ptr.vmem [resolvable:$false] %s2644_s1 }
  0x74   : > { %s2646_s14 = scalar_lea.vmem %s2645_s1, 128  ;;  %p2647_p0 = scmp.lt.s32.totalorder %s266_s26, %s2645_s1 }
  0x75   : > { %p2642_p5 = pnand %p2640_p13, %p2863_p8  ;;  %p2648_p3 = scmp.lt.s32.totalorder %s2646_s14, %s2639_s6 }
  0x77   : > { %p2643_p1 = pneg %p2642_p5  ;;  %p2649_p12 = por %p2648_p3, %p2647_p0 }
  0x79   : > { %p2650_p2 = pnand %p2649_p12, %p2643_p1 }
  0x7b   : > { %2653 = shalt.err (!%p2650_p2)
}
  0x7c   : > { %2238 = dma.hbm_to_vmem [thread:$0]  (!%p2851_p6), %s2974_s17, 64, %s266_s26, %s254_s2  }
  0x7d   : > { %p3780_p7 = scmp.ne.s32.totalorder %s3773_s9, 0 }
  0x7f   : > { %274 = sbr.rel (%p3780_p7) target bundleno = 2247 (0x8c7), region = 36 }
  0x84   : > { %p3781_p9 = scmp.eq.s32.totalorder %s2901_s24, 0 }
  0x86   : > { %2723 = dma.done.wait (%p3781_p9), [#allocation5], 1024   ;;  %p3782_p8 = pmov %p3781_p9 }
  0x87   : > { %s280_s20 = sand.u32 1, %s2901_s24   ;;  %s3013_s21 = sand.u32 1, %s2748_s19  }
  0x88   : > { %2725 = vsyncadd (%p3782_p8), [#allocation5], 4294966272  ;;  %s2108_s22 = sshll.u32 %s3013_s21, 8  ;;  %s281_s25 = scalar_lea.sflag [#allocation8], %s280_s20 }
  0x89   : > { %s3016_s10 = scalar_lea.vmem [#allocation7], %s2108_s22  ;;  %p3783_p6 = scmp.ne.s32.totalorder %s3769_s28, 0 }
  0x8b   : > { %2727 = dma.done.wait (%p3783_p6), %s281_s25, 8192  }
  0x8c   : > { %2729 = vsyncadd (%p3783_p6), %s281_s25, 4294959104  ;;  %s2110_s13 = sshll.u32 %s3013_s21, 2  ;;  %s3023_s9 = scalar_lea.vmem [#allocation9], %s2108_s22 }
  0x8d   : > { %s299_s17 = scalar_lea.sflag [#allocation11], %s3013_s21  ;;  %s3026_s11 = scalar_lea.vmem [#allocation10], %s2110_s13 }
  0x8e   : > { %2731 = dma.done.wait (%p3783_p6), %s299_s17, 64  }
  0x8f   : > { %2733 = vsyncadd (%p3783_p6), %s299_s17, 4294967232  ;;  %s2111_s16 = sshll.u32 %s3013_s21, 3  ;;  %p3784_p2 = scmp.ne.s32.totalorder %s2901_s24, 0 }
  0x90   : > { %s3033_s23 = scalar_lea.vmem [#allocation12], %s2111_s16  ;;  %s3035_s8 = scalar_lea.vmem [#allocation13], %s2111_s16 }
  0x91   : > { %348 = sbr.rel (%p3784_p2) target bundleno = 155 (0x9b), region = 56 }
  0x96   : > { %v349_v0 = vld [vmem:[#allocation4] sm:$0xff]  ;;  %v350_v1 = vld [vmem:[#allocation4 + $0x8] sm:$0xff]  ;;  %v351_v2 = vld [vmem:[#allocation4 + $0x10] sm:$0xff] }
  0x97   : > { %357 = vst [vmem:[#allocation2 + $0x30] sm:$0xff] %v349_v0  ;;  %358 = vst [vmem:[#allocation2] sm:$0xff] %v350_v1  ;;  %v352_v3 = vld [vmem:[#allocation4 + $0x18] sm:$0xff]  ;;  %v353_v4 = vld [vmem:[#allocation4 + $0x20] sm:$0xff] }
  0x98   : > { %359 = vst [vmem:[#allocation2 + $0x18] sm:$0xff] %v351_v2  ;;  %v354_v5 = vld [vmem:[#allocation4 + $0x28] sm:$0xff]  ;;  %360 = vst [vmem:[#allocation2 + $0x10] sm:$0xff] %v352_v3  ;;  %v355_v6 = vld [vmem:[#allocation4 + $0x30] sm:$0xff] }
  0x99   : > { %361 = vst [vmem:[#allocation2 + $0x8] sm:$0xff] %v353_v4  ;;  %362 = vst [vmem:[#allocation2 + $0x20] sm:$0xff] %v354_v5  ;;  %v356_v7 = vld [vmem:[#allocation4 + $0x38] sm:$0xff] }
  0x9a   : > { %363 = vst [vmem:[#allocation2 + $0x28] sm:$0xff] %v355_v6  ;;  %364 = vst [vmem:[#allocation2 + $0x38] sm:$0xff] %v356_v7 }
  0x9b PF: > { %v2288_v8 = vld [vmem:[%s3016_s10 + $0xe4] ss:$16 sps:$4 sm:$0xff]   ;;  %v2290_v9 = vld [vmem:[%s3016_s10 + $0xec] ss:$16 sps:$4 sm:$0xff]   ;;  %v3757_v10 = vmov 0   ;;  %s2204_s28 = sshll.u32 %s2901_s24, 7 }
  0x9c   : > { %623 = vmatprep.mubr.bf16.mxu0 %v3757_v10  ;;  %696 = vmatprep.mubr.bf16.mxu1 %v3757_v10  ;;  %v2292_v11 = vld [vmem:[%s3016_s10 + $0xe0] ss:$16 sps:$4 sm:$0xff]   ;;  %v2293_v12 = vld [vmem:[%s3016_s10 + $0xe8] ss:$16 sps:$4 sm:$0xff]   ;;  %v2294_v13 = vld [vmem:[%s3016_s10 + $0xc4] ss:$16 sps:$4 sm:$0xff]   ;;  %s3669_s30 = scalar_lea.hbm %s3744_s5, %s2204_s28 }
  0x9d   : > { %591 = vmatprep.subr.bf16.mxu0 %v2288_v8  ;;  %664 = vmatprep.subr.bf16.mxu1 %v2290_v9  ;;  %v2296_v14 = vld [vmem:[%s3016_s10 + $0xcc] ss:$16 sps:$4 sm:$0xff]   ;;  %v2298_v15 = vld [vmem:[%s3016_s10 + $0xc0] ss:$16 sps:$4 sm:$0xff]   ;;  %v2299_v16 = vld [vmem:[%s3016_s10 + $0xc8] ss:$16 sps:$4 sm:$0xff]  }
  0x9e   : > { %592 = vmatpush1.bf16.msra.mxu0 %v2292_v11  ;;  %665 = vmatpush1.bf16.msra.mxu1 %v2293_v12  ;;  %v2300_v17 = vld [vmem:[%s3016_s10 + $0xa4] ss:$16 sps:$4 sm:$0xff]   ;;  %v2302_v18 = vld [vmem:[%s3016_s10 + $0xac] ss:$16 sps:$4 sm:$0xff]   ;;  %v2304_v19 = vld [vmem:[%s3016_s10 + $0xa0] ss:$16 sps:$4 sm:$0xff]  }
  0x9f   : > { %593 = vmatprep.subr.bf16.mxu0 %v2294_v13  ;;  %666 = vmatprep.subr.bf16.mxu1 %v2296_v14  ;;  %v2305_v20 = vld [vmem:[%s3016_s10 + $0xa8] ss:$16 sps:$4 sm:$0xff]   ;;  %v2306_v21 = vld [vmem:[%s3016_s10 + $0x84] ss:$16 sps:$4 sm:$0xff]   ;;  %v2308_v22 = vld [vmem:[%s3016_s10 + $0x8c] ss:$16 sps:$4 sm:$0xff]  }
  0xa0   : > { %v2310_v23 = vld [vmem:[%s3016_s10 + $0x80] ss:$16 sps:$4 sm:$0xff]   ;;  %v2311_v24 = vld [vmem:[%s3016_s10 + $0x88] ss:$16 sps:$4 sm:$0xff]   ;;  %v2312_v25 = vld [vmem:[%s3016_s10 + $0x64] ss:$16 sps:$4 sm:$0xff]  }
  0xa1   : > { %v2314_v26 = vld [vmem:[%s3016_s10 + $0x6c] ss:$16 sps:$4 sm:$0xff]   ;;  %v2316_v27 = vld [vmem:[%s3016_s10 + $0x60] ss:$16 sps:$4 sm:$0xff]   ;;  %v2317_v28 = vld [vmem:[%s3016_s10 + $0x68] ss:$16 sps:$4 sm:$0xff]  }
  0xa2   : > { %594 = vmatpush1.bf16.msra.mxu0 %v2298_v15  ;;  %667 = vmatpush1.bf16.msra.mxu1 %v2299_v16  ;;  %v2318_v29 = vld [vmem:[%s3016_s10 + $0x44] ss:$16 sps:$4 sm:$0xff]   ;;  %v2320_v30 = vld [vmem:[%s3016_s10 + $0x4c] ss:$16 sps:$4 sm:$0xff]   ;;  %v2322_v31 = vld [vmem:[%s3016_s10 + $0x40] ss:$16 sps:$4 sm:$0xff]  }
  0xa3   : > { %595 = vmatprep.subr.bf16.mxu0 %v2300_v17  ;;  %668 = vmatprep.subr.bf16.mxu1 %v2302_v18  ;;  %v2323_v32 = vld [vmem:[%s3016_s10 + $0x48] ss:$16 sps:$4 sm:$0xff]   ;;  %v2324_v33 = vld [vmem:[%s3016_s10 + $0x24] ss:$16 sps:$4 sm:$0xff]   ;;  %v2326_v34 = vld [vmem:[%s3016_s10 + $0x2c] ss:$16 sps:$4 sm:$0xff]  }
  0xa4   : > { %v2328_v35 = vld [vmem:[%s3016_s10 + $0x20] ss:$16 sps:$4 sm:$0xff]   ;;  %v2329_v36 = vld [vmem:[%s3016_s10 + $0x28] ss:$16 sps:$4 sm:$0xff]   ;;  %v2330_v37 = vld [vmem:[%s3016_s10 + $0x4] ss:$16 sps:$4 sm:$0xff]  }
  0xa5   : > { %v2332_v38 = vld [vmem:[%s3016_s10 + $0xc] ss:$16 sps:$4 sm:$0xff]   ;;  %v2334_v39 = vld [vmem:[%s3016_s10] ss:$16 sps:$4 sm:$0xff]   ;;  %v2335_v40 = vld [vmem:[%s3016_s10 + $0x8] ss:$16 sps:$4 sm:$0xff]  }
  0xa6   : > { %596 = vmatpush1.bf16.msra.mxu0 %v2304_v19  ;;  %669 = vmatpush1.bf16.msra.mxu1 %v2305_v20  ;;  %v365_v41 = vld [vmem:[#allocation2 + $0x30] sm:$0xff]  ;;  %v366_v42 = vld [vmem:[#allocation2] sm:$0xff]  ;;  %v3077_v44 = vld [vmem:[%s3023_s9 + $0xec] ss:$16 sps:$4 sm:$0xff]   ;;  %s1936_s12 = sshll.u32 %s3035_s8, 4  ;;  %s1910_s15 = scalar_lea.sflag [#allocation14], %s3013_s21  ;;  %s3671_s12 = int_to_ptr.vmem [resolvable:$true] %s1936_s12 }
  0xa7   : > { %597 = vmatprep.subr.bf16.mxu0 %v2306_v21  ;;  %670 = vmatprep.subr.bf16.mxu1 %v2308_v22  ;;  %v3074_v43 = vld [vmem:[%s3023_s9 + $0xe4] ss:$16 sps:$4 sm:$0xff]   ;;  %v373_v45 = vpack.c.bf16 %v366_v42, %v365_v41  ;;  %v3080_v46 = vld [vmem:[%s3023_s9 + $0xe0] ss:$16 sps:$4 sm:$0xff]   ;;  %v3083_v47 = vld [vmem:[%s3023_s9 + $0xe8] ss:$16 sps:$4 sm:$0xff]   ;;  %v411_v22 = vlaneseq }
  0xa8   : > { %v3088_v48 = vld [vmem:[%s3023_s9 + $0xc4] ss:$16 sps:$4 sm:$0xff]   ;;  %v3091_v49 = vld [vmem:[%s3023_s9 + $0xcc] ss:$16 sps:$4 sm:$0xff]   ;;  %v3094_v50 = vld [vmem:[%s3023_s9 + $0xc0] ss:$16 sps:$4 sm:$0xff]  }
  0xa9   : > { %v3097_v51 = vld [vmem:[%s3023_s9 + $0xc8] ss:$16 sps:$4 sm:$0xff]   ;;  %v368_v53 = vld [vmem:[#allocation2 + $0x10] sm:$0xff]  ;;  %v3107_v55 = vld [vmem:[%s3023_s9 + $0xac] ss:$16 sps:$4 sm:$0xff]   ;;  %s2654_s6 = scalar_lea.vmem %s3671_s12, 128 }
  0xaa   : > { %598 = vmatpush1.bf16.msra.mxu0 %v2310_v23  ;;  %671 = vmatpush1.bf16.msra.mxu1 %v2311_v24  ;;  %v367_v52 = vld [vmem:[#allocation2 + $0x18] sm:$0xff]  ;;  %v3102_v54 = vld [vmem:[%s3023_s9 + $0xa4] ss:$16 sps:$4 sm:$0xff]   ;;  %v3112_v57 = vld [vmem:[%s3023_s9 + $0xa0] ss:$16 sps:$4 sm:$0xff]   ;;  %v412_v23 = vshrl.u32 %v411_v22, 7  ;;  %p2655_p10 = scmp.ne.s32.totalorder %s3671_s12, %s2654_s6 }
  0xab   : > { %599 = vmatprep.subr.bf16.mxu0 %v2312_v25  ;;  %672 = vmatprep.subr.bf16.mxu1 %v2314_v26  ;;  %v374_v56 = vpack.c.bf16 %v368_v53, %v367_v52  ;;  %v3115_v58 = vld [vmem:[%s3023_s9 + $0xa8] ss:$16 sps:$4 sm:$0xff]   ;;  %v3120_v59 = vld [vmem:[%s3023_s9 + $0x84] ss:$16 sps:$4 sm:$0xff]   ;;  %v3125_v60 = vld [vmem:[%s3023_s9 + $0x8c] ss:$16 sps:$4 sm:$0xff]  }
  0xac   : > { %v3128_v61 = vld [vmem:[%s3023_s9 + $0x80] ss:$16 sps:$4 sm:$0xff]   ;;  %v3131_v62 = vld [vmem:[%s3023_s9 + $0x88] ss:$16 sps:$4 sm:$0xff]   ;;  %v3138_v1 = vld [vmem:[%s3023_s9 + $0x64] ss:$16 sps:$4 sm:$0xff]  }
  0xad   : > { %v369_v63 = vld [vmem:[#allocation2 + $0x8] sm:$0xff]  ;;  %v370_v0 = vld [vmem:[#allocation2 + $0x20] sm:$0xff]  ;;  %v372_v12 = vld [vmem:[#allocation2 + $0x38] sm:$0xff]  ;;  %v421_v24 = vsub.s32 2, %v412_v23  ;;  %v413_v25 = vsub.s32 0, %v412_v23  ;;  %v425_v26 = vsub.s32 3, %v412_v23 }
  0xae   : > { %600 = vmatpush1.bf16.msra.mxu0 %v2316_v27  ;;  %673 = vmatpush1.bf16.msra.mxu1 %v2317_v28  ;;  %v3141_v2 = vld [vmem:[%s3023_s9 + $0x6c] ss:$16 sps:$4 sm:$0xff]   ;;  %v375_v3 = vpack.c.bf16 %v370_v0, %v369_v63  ;;  %v3148_v4 = vld [vmem:[%s3023_s9 + $0x60] ss:$16 sps:$4 sm:$0xff]   ;;  %v3151_v5 = vld [vmem:[%s3023_s9 + $0x68] ss:$16 sps:$4 sm:$0xff]  }
  0xaf   : > { %601 = vmatprep.subr.bf16.mxu0 %v2318_v29  ;;  %674 = vmatprep.subr.bf16.mxu1 %v2320_v30  ;;  %v3156_v6 = vld [vmem:[%s3023_s9 + $0x44] ss:$16 sps:$4 sm:$0xff]   ;;  %v3159_v7 = vld [vmem:[%s3023_s9 + $0x4c] ss:$16 sps:$4 sm:$0xff]   ;;  %v3162_v8 = vld [vmem:[%s3023_s9 + $0x40] ss:$16 sps:$4 sm:$0xff]  }
  0xb0   : > { %v3167_v9 = vld [vmem:[%s3023_s9 + $0x48] ss:$16 sps:$4 sm:$0xff]   ;;  %v3172_v13 = vld [vmem:[%s3023_s9 + $0x24] ss:$16 sps:$4 sm:$0xff]   ;;  %v3175_v14 = vld [vmem:[%s3023_s9 + $0x2c] ss:$16 sps:$4 sm:$0xff]  }
  0xb1   : > { %v371_v11 = vld [vmem:[#allocation2 + $0x28] sm:$0xff]  ;;  %v3182_v16 = vld [vmem:[%s3023_s9 + $0x20] ss:$16 sps:$4 sm:$0xff]   ;;  %v3190_v18 = vld [vmem:[%s3023_s9 + $0x4] ss:$16 sps:$4 sm:$0xff]   ;;  %p3824_p11 = scmp.ne.s32.totalorder %s3771_s29, 0 }
  0xb2   : > { %602 = vmatpush1.bf16.msra.mxu0 %v2322_v31  ;;  %675 = vmatpush1.bf16.msra.mxu1 %v2323_v32  ;;  %v376_v15 = vpack.c.bf16 %v372_v12, %v371_v11  ;;  %v3185_v17 = vld [vmem:[%s3023_s9 + $0x28] ss:$16 sps:$4 sm:$0xff]   ;;  %v3193_v19 = vld [vmem:[%s3023_s9 + $0xc] ss:$16 sps:$4 sm:$0xff]   ;;  %v3198_v20 = vld [vmem:[%s3023_s9] ss:$16 sps:$4 sm:$0xff]  }
  0xb3   : > { %603 = vmatprep.subr.bf16.mxu0 %v2324_v33  ;;  %676 = vmatprep.subr.bf16.mxu1 %v2326_v34  ;;  %v3201_v21 = vld [vmem:[%s3023_s9 + $0x8] ss:$16 sps:$4 sm:$0xff]   ;;  %v409_v27 = vld [vmem:[%s3026_s11] sm:$0xf]  ;;  %v417_v31 = vsub.s32 1, %v412_v23  ;;  %p2656_p4 = pnand %p2655_p10, %p3824_p11  ;;  %s2767_s27 = smov [#allocation13]  }
  0xb4   : > { %v3252_v30 = vrot.slane %v409_v27, %v421_v24  ;;  %v414_v34 = vrot.slane %v409_v27, %v413_v25  ;;  %s2658_s1 = sshll.u32 %s2767_s27, 4  ;;  %s2659_s1 = int_to_ptr.vmem [resolvable:$false] %s2658_s1 }
  0xb5   : > { %p2657_p13 = pneg %p2656_p4  ;;  %s2660_s14 = scalar_lea.vmem %s2659_s1, 256 }
  0xb6   : > { %604 = vmatpush1.bf16.msra.mxu0 %v2328_v35  ;;  %677 = vmatpush1.bf16.msra.mxu1 %v2329_v36  ;;  %v3258_v35 = vrot.slane %v409_v27, %v425_v26  ;;  %p2661_p5 = scmp.lt.s32.totalorder %s3671_s12, %s2659_s1  ;;  %p2662_p1 = scmp.lt.s32.totalorder %s2660_s14, %s2654_s6 }
  0xb7   : > { %605 = vmatprep.subr.bf16.mxu0 %v2330_v37  ;;  %678 = vmatprep.subr.bf16.mxu1 %v2332_v38  ;;  %v418_v38 = vrot.slane %v409_v27, %v417_v31 }
  0xb8   : > { %p2663_p0 = por %p2662_p1, %p2661_p5 }
  0xba   : > { %606 = vmatpush1.bf16.msra.mxu0 %v2334_v39  ;;  %679 = vmatpush1.bf16.msra.mxu1 %v2335_v40  ;;  %p2664_p3 = pnand %p2663_p0, %p2657_p13 }
  0xbb   : > { %965 = vmatprep.subr.bf16.mxu0 %v3074_v43  ;;  %1006 = vmatprep.subr.bf16.mxu1 %v3077_v44 }
  0xbd   : > { %624 = vmatmul.mubr.bf16.vlgmr.msra.gmra.mxu0 %v373_v45  ;;  %697 = vmatmul.mubr.bf16.vlgmr.msra.gmra.mxu1 %v373_v45 }
  0xbe   : > { %966 = vmatpush1.bf16.msra.mxu0 %v3080_v46  ;;  %1007 = vmatpush1.bf16.msra.mxu1 %v3083_v47 }
  0xbf   : > { %967 = vmatprep.subr.bf16.mxu0 %v3088_v48  ;;  %1008 = vmatprep.subr.bf16.mxu1 %v3091_v49 }
  0xc0   : > { %633 = vmatprep.mubr.bf16.mxu0 %v3757_v10  ;;  %706 = vmatprep.mubr.bf16.mxu1 %v3757_v10 }
  0xc2   : > { %968 = vmatpush1.bf16.msra.mxu0 %v3094_v50  ;;  %1009 = vmatpush1.bf16.msra.mxu1 %v3097_v51 }
  0xc3   : > { %969 = vmatprep.subr.bf16.mxu0 %v3102_v54  ;;  %1010 = vmatprep.subr.bf16.mxu1 %v3107_v55 }
  0xc5   : > { %634 = vmatmul.mubr.bf16.gmra.mxu0 %v374_v56  ;;  %707 = vmatmul.mubr.bf16.gmra.mxu1 %v374_v56 }
  0xc6   : > { %970 = vmatpush1.bf16.msra.mxu0 %v3112_v57  ;;  %1011 = vmatpush1.bf16.msra.mxu1 %v3115_v58 }
  0xc7   : > { %971 = vmatprep.subr.bf16.mxu0 %v3120_v59  ;;  %1012 = vmatprep.subr.bf16.mxu1 %v3125_v60 }
  0xc8   : > { %643 = vmatprep.mubr.bf16.mxu0 %v3757_v10  ;;  %716 = vmatprep.mubr.bf16.mxu1 %v3757_v10 }
  0xca   : > { %972 = vmatpush1.bf16.msra.mxu0 %v3128_v61  ;;  %1013 = vmatpush1.bf16.msra.mxu1 %v3131_v62 }
  0xcb   : > { %973 = vmatprep.subr.bf16.mxu0 %v3138_v1  ;;  %1014 = vmatprep.subr.bf16.mxu1 %v3141_v2 }
  0xcd   : > { %644 = vmatmul.mubr.bf16.gmra.mxu0 %v375_v3  ;;  %717 = vmatmul.mubr.bf16.gmra.mxu1 %v375_v3 }
  0xce   : > { %974 = vmatpush1.bf16.msra.mxu0 %v3148_v4  ;;  %1015 = vmatpush1.bf16.msra.mxu1 %v3151_v5 }
  0xcf   : > { %975 = vmatprep.subr.bf16.mxu0 %v3156_v6  ;;  %1016 = vmatprep.subr.bf16.mxu1 %v3159_v7 }
  0xd0   : > { %653 = vmatprep.mubr.bf16.mxu0 %v3757_v10  ;;  %726 = vmatprep.mubr.bf16.mxu1 %v3757_v10 }
  0xd2   : > { %976 = vmatpush1.bf16.msra.mxu0 %v3162_v8  ;;  %1017 = vmatpush1.bf16.msra.mxu1 %v3167_v9 }
  0xd3   : > { %977 = vmatprep.subr.bf16.mxu0 %v3172_v13  ;;  %1018 = vmatprep.subr.bf16.mxu1 %v3175_v14 }
  0xd5   : > { %654 = vmatmul.mubr.bf16.gmra.mxu0 %v376_v15  ;;  %727 = vmatmul.mubr.bf16.gmra.mxu1 %v376_v15 }
  0xd6   : > { %978 = vmatpush1.bf16.msra.mxu0 %v3182_v16  ;;  %1019 = vmatpush1.bf16.msra.mxu1 %v3185_v17 }
  0xd7   : > { %979 = vmatprep.subr.bf16.mxu0 %v3190_v18  ;;  %1020 = vmatprep.subr.bf16.mxu1 %v3193_v19 }
  0xd8   : > { %997 = vmatprep.mubr.bf16.mxu0 %v3757_v10  ;;  %1038 = vmatprep.mubr.bf16.mxu1 %v3757_v10 }
  0xda   : > { %980 = vmatpush1.bf16.msra.mxu0 %v3198_v20  ;;  %1021 = vmatpush1.bf16.msra.mxu1 %v3201_v21 }
  0xdb   : > { %1082 = vmatprep.subr.bf16.mxu0 %v3074_v43  ;;  %1123 = vmatprep.subr.bf16.mxu1 %v3077_v44 }
  0xdd   : > { %998 = vmatmul.mubr.bf16.vlgmr.msra.gmra.mxu0 %v3757_v10  ;;  %1039 = vmatmul.mubr.bf16.vlgmr.msra.gmra.mxu1 %v3757_v10 }
  0xde   : > { %1083 = vmatpush1.bf16.msra.mxu0 %v3080_v46  ;;  %1124 = vmatpush1.bf16.msra.mxu1 %v3083_v47 }
  0xdf   : > { %1084 = vmatprep.subr.bf16.mxu0 %v3088_v48  ;;  %1125 = vmatprep.subr.bf16.mxu1 %v3091_v49 }
  0xe0   : > { %1114 = vmatprep.mubr.bf16.mxu0 %v3757_v10  ;;  %1155 = vmatprep.mubr.bf16.mxu1 %v3757_v10 }
  0xe2   : > { %1085 = vmatpush1.bf16.msra.mxu0 %v3094_v50  ;;  %1126 = vmatpush1.bf16.msra.mxu1 %v3097_v51 }
  0xe3   : > { %1086 = vmatprep.subr.bf16.mxu0 %v3102_v54  ;;  %1127 = vmatprep.subr.bf16.mxu1 %v3107_v55 }
  0xe6   : > { %1087 = vmatpush1.bf16.msra.mxu0 %v3112_v57  ;;  %1128 = vmatpush1.bf16.msra.mxu1 %v3115_v58 }
  0xe7   : > { %1088 = vmatprep.subr.bf16.mxu0 %v3120_v59  ;;  %1129 = vmatprep.subr.bf16.mxu1 %v3125_v60 }
  0xea   : > { %1089 = vmatpush1.bf16.msra.mxu0 %v3128_v61  ;;  %1130 = vmatpush1.bf16.msra.mxu1 %v3131_v62 }
  0xeb   : > { %1090 = vmatprep.subr.bf16.mxu0 %v3138_v1  ;;  %1131 = vmatprep.subr.bf16.mxu1 %v3141_v2 }
  0xee   : > { %1091 = vmatpush1.bf16.msra.mxu0 %v3148_v4  ;;  %1132 = vmatpush1.bf16.msra.mxu1 %v3151_v5 }
  0xef   : > { %1092 = vmatprep.subr.bf16.mxu0 %v3156_v6  ;;  %1133 = vmatprep.subr.bf16.mxu1 %v3159_v7 }
  0xf2   : > { %1093 = vmatpush1.bf16.msra.mxu0 %v3162_v8  ;;  %1134 = vmatpush1.bf16.msra.mxu1 %v3167_v9 }
  0xf3   : > { %1094 = vmatprep.subr.bf16.mxu0 %v3172_v13  ;;  %1135 = vmatprep.subr.bf16.mxu1 %v3175_v14 }
  0xf6   : > { %1095 = vmatpush1.bf16.msra.mxu0 %v3182_v16  ;;  %1136 = vmatpush1.bf16.msra.mxu1 %v3185_v17 }
  0xf7   : > { %1096 = vmatprep.subr.bf16.mxu0 %v3190_v18  ;;  %1137 = vmatprep.subr.bf16.mxu1 %v3193_v19 }
  0xfa   : > { %1097 = vmatpush1.bf16.msra.mxu0 %v3198_v20  ;;  %1138 = vmatpush1.bf16.msra.mxu1 %v3201_v21 }
  0xfb   : > { %1200 = vmatprep.subr.bf16.mxu0 %v3074_v43  ;;  %1241 = vmatprep.subr.bf16.mxu1 %v3077_v44 }
 0x17d   : > { %v3248_v28 = vpop.f32.mrf.mxu0  ;;  %v3250_v29 = vpop.f32.mrf.mxu1 }
 0x17f   : > { %v3254_v32 = vpop.f32.mrf.mxu0  ;;  %v3256_v33 = vpop.f32.mrf.mxu1 }
 0x181   : > { %v629_v36 = vpop.f32.mrf.mxu0  ;;  %v702_v37 = vpop.f32.mrf.mxu1 }
 0x182   : > { %v3260_v39 = vadd.f32 %v629_v36, %v414_v34  ;;  %v3263_v40 = vadd.f32 %v702_v37, %v3252_v30 }
 0x183   : > { %v631_v41 = vpop.f32.mrf.mxu0  ;;  %v704_v42 = vpop.f32.mrf.mxu1 }
 0x184   : > { %v3265_v45 = vadd.f32 %v631_v41, %v418_v38  ;;  %v3268_v52 = vadd.f32 %v704_v42, %v3258_v35 }
 0x185   : > { %v635_v53 = vpop.f32.mrf.mxu0  ;;  %v708_v56 = vpop.f32.mrf.mxu1 }
 0x186   : > { %v3270_v63 = vadd.f32 %v635_v53, %v414_v34  ;;  %v3273_v0 = vadd.f32 %v708_v56, %v3252_v30 }
 0x187   : > { %v637_v3 = vpop.f32.mrf.mxu0  ;;  %v710_v11 = vpop.f32.mrf.mxu1 }
 0x188   : > { %3785 = vst [vmem:[#allocation24_spill] sm:$0xff] %v3273_v0  ;;  %v3275_v12 = vadd.f32 %v637_v3, %v418_v38  ;;  %v3278_v15 = vadd.f32 %v710_v11, %v3258_v35 }
 0x189   : > { %v639_v22 = vpop.f32.mrf.mxu0  ;;  %v712_v23 = vpop.f32.mrf.mxu1 }
 0x18a   : > { %v3280_v24 = vadd.f32 %v639_v22, %v414_v34  ;;  %v3283_v25 = vadd.f32 %v712_v23, %v3252_v30 }
 0x18b   : > { %v641_v26 = vpop.f32.mrf.mxu0  ;;  %v714_v27 = vpop.f32.mrf.mxu1 }
 0x18c   : > { %3786 = vst [vmem:[#allocation25_spill] sm:$0xff] %v3280_v24  ;;  %3787 = vst [vmem:[#allocation26_spill] sm:$0xff] %v3283_v25  ;;  %v3285_v31 = vadd.f32 %v641_v26, %v418_v38  ;;  %v3288_v36 = vadd.f32 %v714_v27, %v3258_v35 }
 0x18d   : > { %v645_v37 = vpop.f32.mrf.mxu0  ;;  %v718_v41 = vpop.f32.mrf.mxu1 }
 0x18e   : > { %3788 = vst [vmem:[#allocation27_spill] sm:$0xff] %v3285_v31  ;;  %3789 = vst [vmem:[#allocation28_spill] sm:$0xff] %v3288_v36  ;;  %v3290_v42 = vadd.f32 %v645_v37, %v414_v34  ;;  %v3293_v53 = vadd.f32 %v718_v41, %v3252_v30 }
 0x18f   : > { %v647_v56 = vpop.f32.mrf.mxu0  ;;  %v720_v3 = vpop.f32.mrf.mxu1 }
 0x190   : > { %3790 = vst [vmem:[#allocation29_spill] sm:$0xff] %v3290_v42  ;;  %3791 = vst [vmem:[#allocation30_spill] sm:$0xff] %v3293_v53  ;;  %v3295_v11 = vadd.f32 %v647_v56, %v418_v38  ;;  %v3298_v22 = vadd.f32 %v720_v3, %v3258_v35 }
 0x191   : > { %v649_v23 = vpop.f32.mrf.mxu0  ;;  %v722_v26 = vpop.f32.mrf.mxu1 }
 0x192   : > { %3792 = vst [vmem:[#allocation31_spill] sm:$0xff] %v3295_v11  ;;  %3793 = vst [vmem:[#allocation32_spill] sm:$0xff] %v3298_v22  ;;  %v3300_v10 = vadd.f32 %v649_v23, %v414_v34  ;;  %v3303_v27 = vadd.f32 %v722_v26, %v3252_v30 }
 0x193   : > { %v651_v25 = vpop.f32.mrf.mxu0  ;;  %v724_v37 = vpop.f32.mrf.mxu1 }
 0x194   : > { %3794 = vst [vmem:[#allocation33_spill] sm:$0xff] %v3300_v10  ;;  %3795 = vst [vmem:[#allocation34_spill] sm:$0xff] %v3303_v27  ;;  %v3305_v42 = vadd.f32 %v651_v25, %v418_v38  ;;  %v3308_v41 = vadd.f32 %v724_v37, %v3258_v35 }
 0x195   : > { %v655_v53 = vpop.f32.mrf.mxu0  ;;  %v728_v56 = vpop.f32.mrf.mxu1 }
 0x196   : > { %3796 = vst [vmem:[#allocation35_spill] sm:$0xff] %v3305_v42  ;;  %3797 = vst [vmem:[#allocation36_spill] sm:$0xff] %v3308_v41  ;;  %v3310_v11 = vadd.f32 %v655_v53, %v414_v34  ;;  %v3313_v3 = vadd.f32 %v728_v56, %v3252_v30 }
 0x197   : > { %v657_v22 = vpop.f32.mrf.mxu0  ;;  %v730_v23 = vpop.f32.mrf.mxu1 }
 0x198   : > { %3798 = vst [vmem:[#allocation37_spill] sm:$0xff] %v3310_v11  ;;  %3799 = vst [vmem:[#allocation38_spill] sm:$0xff] %v3313_v3  ;;  %v3315_v10 = vadd.f32 %v657_v22, %v418_v38  ;;  %v3318_v26 = vadd.f32 %v730_v23, %v3258_v35  ;;  %v626_v11 = vadd.f32 %v3248_v28, %v414_v34 }
 0x199   : > { %v659_v27 = vpop.f32.mrf.mxu0  ;;  %v732_v25 = vpop.f32.mrf.mxu1  ;;  %v628_v23 = vadd.f32 %v3254_v32, %v418_v38 }
 0x19a   : > { %3800 = vst [vmem:[#allocation39_spill] sm:$0xff] %v3315_v10  ;;  %3801 = vst [vmem:[#allocation40_spill] sm:$0xff] %v3318_v26  ;;  %v3320_v42 = vadd.f32 %v659_v27, %v414_v34  ;;  %v3323_v37 = vadd.f32 %v732_v25, %v3252_v30  ;;  %v701_v34 = vadd.f32 %v3256_v33, %v3258_v35 }
 0x19b   : > { %v661_v41 = vpop.f32.mrf.mxu0  ;;  %v734_v53 = vpop.f32.mrf.mxu1 }
 0x19c   : > { %3802 = vst [vmem:[#allocation41_spill] sm:$0xff] %v3320_v42  ;;  %3803 = vst [vmem:[#allocation42_spill] sm:$0xff] %v3323_v37  ;;  %v3326_v56 = vadd.f32 %v661_v41, %v418_v38  ;;  %v3329_v3 = vadd.f32 %v734_v53, %v3258_v35  ;;  %v699_v53 = vadd.f32 %v3250_v29, %v3252_v30 }
 0x19d   : > { %v999_v22 = vpop.f32.mrf.mxu0  ;;  %v1040_v10 = vpop.f32.mrf.mxu1 }
 0x19e   : > { %v1047_v26 = vadd.f32 %v999_v22, %v626_v11  ;;  %v1049_v11 = vadd.f32 %v1040_v10, %v699_v53 }
 0x19f   : > { %v1001_v36 = vpop.f32.mrf.mxu0  ;;  %v1042_v27 = vpop.f32.mrf.mxu1 }
 0x1a0   : > { %v2178_v42 = vmul.f32 -1.442695, %v1047_v26  ;;  %v1048_v31 = vadd.f32 %v1001_v36, %v628_v23  ;;  %v1050_v41 = vadd.f32 %v1042_v27, %v701_v34 }
 0x1a1   : > { %v1003_v25 = vpop.f32.mrf.mxu0  ;;  %v1044_v37 = vpop.f32.mrf.mxu1 }
 0x1a2   : > { %2384 = vpow2.f32 %v2178_v42  ;;  %v2179_v24 = vmul.f32 -1.442695, %v1048_v31  ;;  %v2180_v32 = vmul.f32 -1.442695, %v1050_v41  ;;  %v3804_v25 = vmov 0  }
 0x1a3   : > { %v1004_v0 = vpop.f32.mrf.mxu0  ;;  %v1045_v28 = vpop.f32.mrf.mxu1 }
 0x1a4   : > { %2386 = vpow2.f32 %v2179_v24 }
 0x1a5   : > { %2388 = vpow2.f32 %v2180_v32 }
 0x1af   : > { %v2385_v38 = vpop.eup %2384 }
 0x1b0   : > { %v1054_v22 = vadd.f32 1.0, %v2385_v38 }
 0x1b1   : > { %v2387_v26 = vpop.eup %2386 }
 0x1b2   : > { %2390 = vrcp.f32 %v1054_v22  ;;  %v1060_v36 = vadd.f32 1.0, %v2387_v26  ;;  %v2389_v0 = vpop.eup %2388 }
 0x1b3   : > { %2392 = vtanh.f32 %v1049_v11  ;;  %v1067_v37 = vadd.f32 1.0, %v2389_v0 }
 0x1b4   : > { %2394 = vrcp.f32 %v1060_v36 }
 0x1b5   : > { %2396 = vrcp.f32 %v1067_v37 }
 0x1bf   : > { %v2391_v31 = vpop.eup %2390 }
 0x1c0   : > { %v2393_v24 = vpop.eup %2392 }
 0x1c1   : > { %v2395_v42 = vpop.eup %2394  ;;  %v1071_v35 = vmul.f32 %v2393_v24, %v2391_v31 }
 0x1c2   : > { %v1070_v33 = vmul.f32 0.0, %v2395_v42  ;;  %v2397_v10 = vpop.eup %2396 }
 0x1c4   : > { %v3336_v23 = vadd.f32 %v1071_v35, %v1070_v33 }
 0x1c6   : > { %2398 = vtanh.f32 %v3336_v23 }
 0x1d3   : > { %v2399_v29 = vpop.eup %2398 }
 0x1d4   : > { %v1074_v30 = vmul.f32 %v2399_v29, %v2397_v10 }
 0x1d6   : > { %1075 = vst [vmem:[#allocation2 + $0x30] sm:$0xff] %v1074_v30  ;;  %v1081_v27 = vpack.c.bf16 %v1074_v30, %v1074_v30 }
 0x1d8   : > { %1115 = vmatmul.mubr.bf16.vlgmr.msra.gmra.mxu0 %v1081_v27  ;;  %1156 = vmatmul.mubr.bf16.vlgmr.msra.gmra.mxu1 %v1081_v27 }
 0x1d9   : > { %1201 = vmatpush1.bf16.msra.mxu0 %v3080_v46  ;;  %1242 = vmatpush1.bf16.msra.mxu1 %v3083_v47 }
 0x1da   : > { %1202 = vmatprep.subr.bf16.mxu0 %v3088_v48  ;;  %1243 = vmatprep.subr.bf16.mxu1 %v3091_v49 }
 0x1db   : > { %1232 = vmatprep.mubr.bf16.mxu0 %v3804_v25  ;;  %1273 = vmatprep.mubr.bf16.mxu1 %v3804_v25 }
 0x1dd   : > { %1203 = vmatpush1.bf16.msra.mxu0 %v3094_v50  ;;  %1244 = vmatpush1.bf16.msra.mxu1 %v3097_v51 }
 0x1de   : > { %1204 = vmatprep.subr.bf16.mxu0 %v3102_v54  ;;  %1245 = vmatprep.subr.bf16.mxu1 %v3107_v55 }
 0x1e1   : > { %1205 = vmatpush1.bf16.msra.mxu0 %v3112_v57  ;;  %1246 = vmatpush1.bf16.msra.mxu1 %v3115_v58 }
 0x1e2   : > { %1206 = vmatprep.subr.bf16.mxu0 %v3120_v59  ;;  %1247 = vmatprep.subr.bf16.mxu1 %v3125_v60 }
 0x1e5   : > { %1207 = vmatpush1.bf16.msra.mxu0 %v3128_v61  ;;  %1248 = vmatpush1.bf16.msra.mxu1 %v3131_v62 }
 0x1e6   : > { %1208 = vmatprep.subr.bf16.mxu0 %v3138_v1  ;;  %1249 = vmatprep.subr.bf16.mxu1 %v3141_v2 }
 0x1e9   : > { %1209 = vmatpush1.bf16.msra.mxu0 %v3148_v4  ;;  %1250 = vmatpush1.bf16.msra.mxu1 %v3151_v5 }
 0x1ea   : > { %1210 = vmatprep.subr.bf16.mxu0 %v3156_v6  ;;  %1251 = vmatprep.subr.bf16.mxu1 %v3159_v7 }
 0x1ed   : > { %1211 = vmatpush1.bf16.msra.mxu0 %v3162_v8  ;;  %1252 = vmatpush1.bf16.msra.mxu1 %v3167_v9 }
 0x1ee   : > { %1212 = vmatprep.subr.bf16.mxu0 %v3172_v13  ;;  %1253 = vmatprep.subr.bf16.mxu1 %v3175_v14 }
 0x1f1   : > { %1213 = vmatpush1.bf16.msra.mxu0 %v3182_v16  ;;  %1254 = vmatpush1.bf16.msra.mxu1 %v3185_v17 }
 0x1f2   : > { %1214 = vmatprep.subr.bf16.mxu0 %v3190_v18  ;;  %1255 = vmatprep.subr.bf16.mxu1 %v3193_v19 }
 0x1f5   : > { %1215 = vmatpush1.bf16.msra.mxu0 %v3198_v20  ;;  %1256 = vmatpush1.bf16.msra.mxu1 %v3201_v21 }
 0x1f6   : > { %1318 = vmatprep.subr.bf16.mxu0 %v3074_v43  ;;  %1359 = vmatprep.subr.bf16.mxu1 %v3077_v44 }
 0x298   : > { %v1116_v28 = vpop.f32.mrf.mxu0  ;;  %v1157_v34 = vpop.f32.mrf.mxu1 }
 0x299   : > { %v1164_v41 = vadd.f32 %v1116_v28, %v3260_v39  ;;  %v1166_v42 = vadd.f32 %v1157_v34, %v3263_v40 }
 0x29a   : > { %v1118_v53 = vpop.f32.mrf.mxu0  ;;  %v1159_v32 = vpop.f32.mrf.mxu1 }
 0x29b   : > { %v2181_v38 = vmul.f32 -1.442695, %v1164_v41  ;;  %v1165_v11 = vadd.f32 %v1118_v53, %v3265_v45  ;;  %v1167_v24 = vadd.f32 %v1159_v32, %v3268_v52 }
 0x29c   : > { %v1120_v22 = vpop.f32.mrf.mxu0  ;;  %v1161_v26 = vpop.f32.mrf.mxu1 }
 0x29d   : > { %2400 = vpow2.f32 %v2181_v38  ;;  %v2182_v36 = vmul.f32 -1.442695, %v1165_v11  ;;  %v2183_v37 = vmul.f32 -1.442695, %v1167_v24 }
 0x29e   : > { %v1121_v0 = vpop.f32.mrf.mxu0  ;;  %v1162_v31 = vpop.f32.mrf.mxu1 }
 0x29f   : > { %2402 = vpow2.f32 %v2182_v36 }
 0x2a0   : > { %2404 = vtanh.f32 %v1166_v42 }
 0x2a1   : > { %2406 = vpow2.f32 %v2183_v37 }
 0x2aa   : > { %v2401_v33 = vpop.eup %2400 }
 0x2ab   : > { %v1171_v35 = vadd.f32 1.0, %v2401_v33 }
 0x2ac   : > { %v2403_v39 = vpop.eup %2402 }
 0x2ad   : > { %2408 = vrcp.f32 %v1171_v35  ;;  %v1177_v10 = vadd.f32 1.0, %v2403_v39  ;;  %v2405_v45 = vpop.eup %2404 }
 0x2ae   : > { %v2407_v29 = vpop.eup %2406 }
 0x2af   : > { %2410 = vrcp.f32 %v1177_v10  ;;  %v1184_v41 = vadd.f32 1.0, %v2407_v29  ;;  %v3805_v10 = vld [vmem:[#allocation24_spill] sm:$0xff] }
 0x2b1   : > { %2412 = vrcp.f32 %v1184_v41 }
 0x2ba   : > { %v2409_v30 = vpop.eup %2408 }
 0x2bb   : > { %v1188_v27 = vmul.f32 %v2409_v30, %v2405_v45 }
 0x2bc   : > { %v2411_v28 = vpop.eup %2410 }
 0x2bd   : > { %v1187_v53 = vmul.f32 %v2411_v28, %v3336_v23 }
 0x2be   : > { %v2413_v40 = vpop.eup %2412 }
 0x2bf   : > { %v3378_v52 = vadd.f32 %v1188_v27, %v1187_v53 }
 0x2c1   : > { %2414 = vtanh.f32 %v3378_v52 }
 0x2ce   : > { %v2415_v34 = vpop.eup %2414 }
 0x2cf   : > { %v1191_v32 = vmul.f32 %v2415_v34, %v2413_v40 }
 0x2d1   : > { %1193 = vst [vmem:[#allocation2] sm:$0xff] %v1191_v32  ;;  %v1199_v38 = vpack.c.bf16 %v1191_v32, %v1191_v32 }
 0x2d3   : > { %1233 = vmatmul.mubr.bf16.vlgmr.msra.gmra.mxu0 %v1199_v38  ;;  %1274 = vmatmul.mubr.bf16.vlgmr.msra.gmra.mxu1 %v1199_v38 }
 0x2d4   : > { %1319 = vmatpush1.bf16.msra.mxu0 %v3080_v46  ;;  %1360 = vmatpush1.bf16.msra.mxu1 %v3083_v47 }
 0x2d5   : > { %1320 = vmatprep.subr.bf16.mxu0 %v3088_v48  ;;  %1361 = vmatprep.subr.bf16.mxu1 %v3091_v49 }
 0x2d6   : > { %1350 = vmatprep.mubr.bf16.mxu0 %v3804_v25  ;;  %1391 = vmatprep.mubr.bf16.mxu1 %v3804_v25 }
 0x2d8   : > { %1321 = vmatpush1.bf16.msra.mxu0 %v3094_v50  ;;  %1362 = vmatpush1.bf16.msra.mxu1 %v3097_v51 }
 0x2d9   : > { %1322 = vmatprep.subr.bf16.mxu0 %v3102_v54  ;;  %1363 = vmatprep.subr.bf16.mxu1 %v3107_v55 }
 0x2dc   : > { %1323 = vmatpush1.bf16.msra.mxu0 %v3112_v57  ;;  %1364 = vmatpush1.bf16.msra.mxu1 %v3115_v58 }
 0x2dd   : > { %1324 = vmatprep.subr.bf16.mxu0 %v3120_v59  ;;  %1365 = vmatprep.subr.bf16.mxu1 %v3125_v60 }
 0x2e0   : > { %1325 = vmatpush1.bf16.msra.mxu0 %v3128_v61  ;;  %1366 = vmatpush1.bf16.msra.mxu1 %v3131_v62 }
 0x2e1   : > { %1326 = vmatprep.subr.bf16.mxu0 %v3138_v1  ;;  %1367 = vmatprep.subr.bf16.mxu1 %v3141_v2 }
 0x2e4   : > { %1327 = vmatpush1.bf16.msra.mxu0 %v3148_v4  ;;  %1368 = vmatpush1.bf16.msra.mxu1 %v3151_v5 }
 0x2e5   : > { %1328 = vmatprep.subr.bf16.mxu0 %v3156_v6  ;;  %1369 = vmatprep.subr.bf16.mxu1 %v3159_v7 }
 0x2e8   : > { %1329 = vmatpush1.bf16.msra.mxu0 %v3162_v8  ;;  %1370 = vmatpush1.bf16.msra.mxu1 %v3167_v9 }
 0x2e9   : > { %1330 = vmatprep.subr.bf16.mxu0 %v3172_v13  ;;  %1371 = vmatprep.subr.bf16.mxu1 %v3175_v14 }
 0x2ec   : > { %1331 = vmatpush1.bf16.msra.mxu0 %v3182_v16  ;;  %1372 = vmatpush1.bf16.msra.mxu1 %v3185_v17 }
 0x2ed   : > { %1332 = vmatprep.subr.bf16.mxu0 %v3190_v18  ;;  %1373 = vmatprep.subr.bf16.mxu1 %v3193_v19 }
 0x2f0   : > { %1333 = vmatpush1.bf16.msra.mxu0 %v3198_v20  ;;  %1374 = vmatpush1.bf16.msra.mxu1 %v3201_v21 }
 0x2f1   : > { %1436 = vmatprep.subr.bf16.mxu0 %v3074_v43  ;;  %1477 = vmatprep.subr.bf16.mxu1 %v3077_v44 }
 0x393   : > { %v1234_v23 = vpop.f32.mrf.mxu0  ;;  %v1275_v11 = vpop.f32.mrf.mxu1 }
 0x394   : > { %v1282_v22 = vadd.f32 %v1234_v23, %v3270_v63  ;;  %v1284_v45 = vadd.f32 %v1275_v11, %v3805_v10 }
 0x395   : > { %v1236_v26 = vpop.f32.mrf.mxu0  ;;  %v1277_v36 = vpop.f32.mrf.mxu1 }
 0x396   : > { %v2184_v0 = vmul.f32 -1.442695, %v1282_v22  ;;  %v1283_v31 = vadd.f32 %v1236_v26, %v3275_v12  ;;  %v1285_v39 = vadd.f32 %v1277_v36, %v3278_v15 }
 0x397   : > { %v1238_v24 = vpop.f32.mrf.mxu0  ;;  %v1279_v42 = vpop.f32.mrf.mxu1 }
 0x398   : > { %2416 = vpow2.f32 %v2184_v0  ;;  %v2185_v37 = vmul.f32 -1.442695, %v1283_v31  ;;  %v2186_v29 = vmul.f32 -1.442695, %v1285_v39  ;;  %v3806_v0 = vld [vmem:[#allocation25_spill] sm:$0xff] }
 0x399   : > { %v1239_v33 = vpop.f32.mrf.mxu0  ;;  %v1280_v35 = vpop.f32.mrf.mxu1 }
 0x39a   : > { %2418 = vpow2.f32 %v2185_v37  ;;  %v3807_v33 = vld [vmem:[#allocation27_spill] sm:$0xff] }
 0x39b   : > { %2420 = vtanh.f32 %v1284_v45 }
 0x39c   : > { %2422 = vpow2.f32 %v2186_v29 }
 0x3a5   : > { %v2417_v30 = vpop.eup %2416 }
 0x3a6   : > { %v1289_v27 = vadd.f32 1.0, %v2417_v30 }
 0x3a7   : > { %v2419_v63 = vpop.eup %2418 }
 0x3a8   : > { %2424 = vrcp.f32 %v1289_v27  ;;  %v1295_v28 = vadd.f32 1.0, %v2419_v63  ;;  %v2421_v12 = vpop.eup %2420  ;;  %v3808_v27 = vld [vmem:[#allocation28_spill] sm:$0xff]  ;;  %v3809_v63 = vld [vmem:[#allocation26_spill] sm:$0xff] }
 0x3a9   : > { %v2423_v41 = vpop.eup %2422 }
 0x3aa   : > { %2426 = vrcp.f32 %v1295_v28  ;;  %v1302_v32 = vadd.f32 1.0, %v2423_v41 }
 0x3ac   : > { %2428 = vrcp.f32 %v1302_v32 }
 0x3b5   : > { %v2425_v53 = vpop.eup %2424 }
 0x3b6   : > { %v1306_v40 = vmul.f32 %v2425_v53, %v2421_v12 }
 0x3b7   : > { %v2427_v34 = vpop.eup %2426 }
 0x3b8   : > { %v1305_v38 = vmul.f32 %v2427_v34, %v3378_v52 }
 0x3b9   : > { %v2429_v23 = vpop.eup %2428 }
 0x3ba   : > { %v3420_v15 = vadd.f32 %v1306_v40, %v1305_v38 }
 0x3bc   : > { %2430 = vtanh.f32 %v3420_v15 }
 0x3c9   : > { %v2431_v11 = vpop.eup %2430 }
 0x3ca   : > { %v1309_v22 = vmul.f32 %v2431_v11, %v2429_v23 }
 0x3cc   : > { %1311 = vst [vmem:[#allocation2 + $0x18] sm:$0xff] %v1309_v22  ;;  %v1317_v26 = vpack.c.bf16 %v1309_v22, %v1309_v22 }
 0x3ce   : > { %1351 = vmatmul.mubr.bf16.vlgmr.msra.gmra.mxu0 %v1317_v26  ;;  %1392 = vmatmul.mubr.bf16.vlgmr.msra.gmra.mxu1 %v1317_v26 }
 0x3cf   : > { %1437 = vmatpush1.bf16.msra.mxu0 %v3080_v46  ;;  %1478 = vmatpush1.bf16.msra.mxu1 %v3083_v47 }
 0x3d0   : > { %1438 = vmatprep.subr.bf16.mxu0 %v3088_v48  ;;  %1479 = vmatprep.subr.bf16.mxu1 %v3091_v49 }
 0x3d1   : > { %1468 = vmatprep.mubr.bf16.mxu0 %v3804_v25  ;;  %1509 = vmatprep.mubr.bf16.mxu1 %v3804_v25 }
 0x3d3   : > { %1439 = vmatpush1.bf16.msra.mxu0 %v3094_v50  ;;  %1480 = vmatpush1.bf16.msra.mxu1 %v3097_v51 }
 0x3d4   : > { %1440 = vmatprep.subr.bf16.mxu0 %v3102_v54  ;;  %1481 = vmatprep.subr.bf16.mxu1 %v3107_v55 }
 0x3d7   : > { %1441 = vmatpush1.bf16.msra.mxu0 %v3112_v57  ;;  %1482 = vmatpush1.bf16.msra.mxu1 %v3115_v58 }
 0x3d8   : > { %1442 = vmatprep.subr.bf16.mxu0 %v3120_v59  ;;  %1483 = vmatprep.subr.bf16.mxu1 %v3125_v60 }
 0x3db   : > { %1443 = vmatpush1.bf16.msra.mxu0 %v3128_v61  ;;  %1484 = vmatpush1.bf16.msra.mxu1 %v3131_v62 }
 0x3dc   : > { %1444 = vmatprep.subr.bf16.mxu0 %v3138_v1  ;;  %1485 = vmatprep.subr.bf16.mxu1 %v3141_v2 }
 0x3df   : > { %1445 = vmatpush1.bf16.msra.mxu0 %v3148_v4  ;;  %1486 = vmatpush1.bf16.msra.mxu1 %v3151_v5 }
 0x3e0   : > { %1446 = vmatprep.subr.bf16.mxu0 %v3156_v6  ;;  %1487 = vmatprep.subr.bf16.mxu1 %v3159_v7 }
 0x3e3   : > { %1447 = vmatpush1.bf16.msra.mxu0 %v3162_v8  ;;  %1488 = vmatpush1.bf16.msra.mxu1 %v3167_v9 }
 0x3e4   : > { %1448 = vmatprep.subr.bf16.mxu0 %v3172_v13  ;;  %1489 = vmatprep.subr.bf16.mxu1 %v3175_v14 }
 0x3e7   : > { %1449 = vmatpush1.bf16.msra.mxu0 %v3182_v16  ;;  %1490 = vmatpush1.bf16.msra.mxu1 %v3185_v17 }
 0x3e8   : > { %1450 = vmatprep.subr.bf16.mxu0 %v3190_v18  ;;  %1491 = vmatprep.subr.bf16.mxu1 %v3193_v19 }
 0x3eb   : > { %1451 = vmatpush1.bf16.msra.mxu0 %v3198_v20  ;;  %1492 = vmatpush1.bf16.msra.mxu1 %v3201_v21 }
 0x3ec   : > { %1554 = vmatprep.subr.bf16.mxu0 %v3074_v43  ;;  %1595 = vmatprep.subr.bf16.mxu1 %v3077_v44 }
 0x48e   : > { %v1352_v52 = vpop.f32.mrf.mxu0  ;;  %v1393_v36 = vpop.f32.mrf.mxu1 }
 0x48f   : > { %v1400_v31 = vadd.f32 %v1352_v52, %v3806_v0  ;;  %v1402_v44 = vadd.f32 %v1393_v36, %v3809_v63 }
 0x490   : > { %v1354_v24 = vpop.f32.mrf.mxu0  ;;  %v1395_v42 = vpop.f32.mrf.mxu1 }
 0x491   : > { %v2187_v37 = vmul.f32 -1.442695, %v1400_v31  ;;  %v1401_v35 = vadd.f32 %v1354_v24, %v3807_v33  ;;  %v1403_v43 = vadd.f32 %v1395_v42, %v3808_v27 }
 0x492   : > { %v1356_v39 = vpop.f32.mrf.mxu0  ;;  %v1397_v10 = vpop.f32.mrf.mxu1 }
 0x493   : > { %2432 = vpow2.f32 %v2187_v37  ;;  %v2188_v45 = vmul.f32 -1.442695, %v1401_v35  ;;  %v2189_v28 = vmul.f32 -1.442695, %v1403_v43 }
 0x494   : > { %v1357_v29 = vpop.f32.mrf.mxu0  ;;  %v1398_v30 = vpop.f32.mrf.mxu1 }
 0x495   : > { %2434 = vpow2.f32 %v2188_v45 }
 0x496   : > { %2436 = vtanh.f32 %v1402_v44 }
 0x497   : > { %2438 = vpow2.f32 %v2189_v28 }
 0x4a0   : > { %v2433_v12 = vpop.eup %2432 }
 0x4a1   : > { %v1407_v41 = vadd.f32 1.0, %v2433_v12  ;;  %v3514_v12 = vld [vmem:[%s3023_s9 + $0xe0] ss:$16 sps:$4 sm:$0xff]  }
 0x4a2   : > { %v2435_v53 = vpop.eup %2434 }
 0x4a3   : > { %2440 = vrcp.f32 %v1407_v41  ;;  %v1413_v40 = vadd.f32 1.0, %v2435_v53  ;;  %v2437_v34 = vpop.eup %2436  ;;  %v3518_v41 = vld [vmem:[%s3023_s9 + $0xe8] ss:$16 sps:$4 sm:$0xff]   ;;  %v3522_v53 = vld [vmem:[%s3023_s9 + $0xc4] ss:$16 sps:$4 sm:$0xff]  }
 0x4a4   : > { %v2439_v32 = vpop.eup %2438 }
 0x4a5   : > { %2442 = vrcp.f32 %v1413_v40  ;;  %v1420_v22 = vadd.f32 1.0, %v2439_v32  ;;  %v3526_v40 = vld [vmem:[%s3023_s9 + $0xcc] ss:$16 sps:$4 sm:$0xff]   ;;  %v3536_v32 = vld [vmem:[%s3023_s9 + $0xc8] ss:$16 sps:$4 sm:$0xff]  }
 0x4a7   : > { %2444 = vrcp.f32 %v1420_v22  ;;  %v3552_v22 = vld [vmem:[%s3023_s9 + $0xa8] ss:$16 sps:$4 sm:$0xff]  }
 0x4b0   : > { %v2441_v38 = vpop.eup %2440 }
 0x4b1   : > { %v1424_v23 = vmul.f32 %v2441_v38, %v2437_v34  ;;  %v3532_v34 = vld [vmem:[%s3023_s9 + $0xc0] ss:$16 sps:$4 sm:$0xff]   ;;  %v3540_v38 = vld [vmem:[%s3023_s9 + $0xa4] ss:$16 sps:$4 sm:$0xff]  }
 0x4b2   : > { %v2443_v11 = vpop.eup %2442 }
 0x4b3   : > { %v1423_v26 = vmul.f32 %v2443_v11, %v3420_v15  ;;  %v3548_v11 = vld [vmem:[%s3023_s9 + $0xa0] ss:$16 sps:$4 sm:$0xff]  }
 0x4b4   : > { %v2445_v36 = vpop.eup %2444 }
 0x4b5   : > { %v3462_v52 = vadd.f32 %v1424_v23, %v1423_v26  ;;  %v3544_v23 = vld [vmem:[%s3023_s9 + $0xac] ss:$16 sps:$4 sm:$0xff]   ;;  %v3556_v26 = vld [vmem:[%s3023_s9 + $0x84] ss:$16 sps:$4 sm:$0xff]  }
 0x4b7   : > { %2446 = vtanh.f32 %v3462_v52 }
 0x4c4   : > { %v2447_v0 = vpop.eup %2446 }
 0x4c5   : > { %v1427_v31 = vmul.f32 %v2447_v0, %v2445_v36  ;;  %v3564_v36 = vld [vmem:[%s3023_s9 + $0x80] ss:$16 sps:$4 sm:$0xff]   ;;  %v3568_v0 = vld [vmem:[%s3023_s9 + $0x88] ss:$16 sps:$4 sm:$0xff]  }
 0x4c7   : > { %1429 = vst [vmem:[#allocation2 + $0x10] sm:$0xff] %v1427_v31  ;;  %v1435_v24 = vpack.c.bf16 %v1427_v31, %v1427_v31  ;;  %v3572_v31 = vld [vmem:[%s3023_s9 + $0x64] ss:$16 sps:$4 sm:$0xff]  }
 0x4c9   : > { %1469 = vmatmul.mubr.bf16.vlgmr.msra.gmra.mxu0 %v1435_v24  ;;  %1510 = vmatmul.mubr.bf16.vlgmr.msra.gmra.mxu1 %v1435_v24  ;;  %v3576_v24 = vld [vmem:[%s3023_s9 + $0x6c] ss:$16 sps:$4 sm:$0xff]  }
 0x4ca   : > { %1555 = vmatpush1.bf16.msra.mxu0 %v3080_v46  ;;  %1596 = vmatpush1.bf16.msra.mxu1 %v3083_v47  ;;  %v3498_v46 = vld [vmem:[%s3023_s9 + $0xe4] ss:$16 sps:$4 sm:$0xff]   ;;  %v3502_v47 = vld [vmem:[%s3023_s9 + $0xec] ss:$16 sps:$4 sm:$0xff]  }
 0x4cb   : > { %1556 = vmatprep.subr.bf16.mxu0 %v3088_v48  ;;  %1597 = vmatprep.subr.bf16.mxu1 %v3091_v49 }
 0x4cc   : > { %1586 = vmatprep.mubr.bf16.mxu0 %v3804_v25  ;;  %1627 = vmatprep.mubr.bf16.mxu1 %v3804_v25 }
 0x4ce   : > { %1557 = vmatpush1.bf16.msra.mxu0 %v3094_v50  ;;  %1598 = vmatpush1.bf16.msra.mxu1 %v3097_v51  ;;  %v3810_v50 = vld [vmem:[#allocation29_spill] sm:$0xff] }
 0x4cf   : > { %1558 = vmatprep.subr.bf16.mxu0 %v3102_v54  ;;  %1599 = vmatprep.subr.bf16.mxu1 %v3107_v55 }
 0x4d2   : > { %1559 = vmatpush1.bf16.msra.mxu0 %v3112_v57  ;;  %1600 = vmatpush1.bf16.msra.mxu1 %v3115_v58  ;;  %v3811_v58 = vld [vmem:[#allocation31_spill] sm:$0xff] }
 0x4d3   : > { %1560 = vmatprep.subr.bf16.mxu0 %v3120_v59  ;;  %1601 = vmatprep.subr.bf16.mxu1 %v3125_v60 }
 0x4d6   : > { %1561 = vmatpush1.bf16.msra.mxu0 %v3128_v61  ;;  %1602 = vmatpush1.bf16.msra.mxu1 %v3131_v62 }
 0x4d7   : > { %1562 = vmatprep.subr.bf16.mxu0 %v3138_v1  ;;  %1603 = vmatprep.subr.bf16.mxu1 %v3141_v2 }
 0x4da   : > { %1563 = vmatpush1.bf16.msra.mxu0 %v3148_v4  ;;  %1604 = vmatpush1.bf16.msra.mxu1 %v3151_v5  ;;  %v3812_v4 = vld [vmem:[#allocation32_spill] sm:$0xff] }
 0x4db   : > { %1564 = vmatprep.subr.bf16.mxu0 %v3156_v6  ;;  %1605 = vmatprep.subr.bf16.mxu1 %v3159_v7  ;;  %v3813_v6 = vld [vmem:[#allocation30_spill] sm:$0xff] }
 0x4de   : > { %1565 = vmatpush1.bf16.msra.mxu0 %v3162_v8  ;;  %1606 = vmatpush1.bf16.msra.mxu1 %v3167_v9 }
 0x4df   : > { %1566 = vmatprep.subr.bf16.mxu0 %v3172_v13  ;;  %1607 = vmatprep.subr.bf16.mxu1 %v3175_v14 }
 0x4e2   : > { %1567 = vmatpush1.bf16.msra.mxu0 %v3182_v16  ;;  %1608 = vmatpush1.bf16.msra.mxu1 %v3185_v17 }
 0x4e3   : > { %1568 = vmatprep.subr.bf16.mxu0 %v3190_v18  ;;  %1609 = vmatprep.subr.bf16.mxu1 %v3193_v19 }
 0x4e6   : > { %1569 = vmatpush1.bf16.msra.mxu0 %v3198_v20  ;;  %1610 = vmatpush1.bf16.msra.mxu1 %v3201_v21 }
 0x4e7   : > { %1672 = vmatprep.subr.bf16.mxu0 %v3498_v46  ;;  %1713 = vmatprep.subr.bf16.mxu1 %v3502_v47 }
 0x589   : > { %v1470_v48 = vpop.f32.mrf.mxu0  ;;  %v1511_v49 = vpop.f32.mrf.mxu1 }
 0x58a   : > { %v1518_v51 = vadd.f32 %v1470_v48, %v3810_v50  ;;  %v1520_v7 = vadd.f32 %v1511_v49, %v3813_v6  ;;  %v3580_v48 = vld [vmem:[%s3023_s9 + $0x60] ss:$16 sps:$4 sm:$0xff]   ;;  %v3584_v49 = vld [vmem:[%s3023_s9 + $0x68] ss:$16 sps:$4 sm:$0xff]   ;;  %v3588_v50 = vld [vmem:[%s3023_s9 + $0x44] ss:$16 sps:$4 sm:$0xff]  }
 0x58b   : > { %v1472_v54 = vpop.f32.mrf.mxu0  ;;  %v1513_v55 = vpop.f32.mrf.mxu1 }
 0x58c   : > { %v2190_v57 = vmul.f32 -1.442695, %v1518_v51  ;;  %v1519_v59 = vadd.f32 %v1472_v54, %v3811_v58  ;;  %v1521_v5 = vadd.f32 %v1513_v55, %v3812_v4  ;;  %v3592_v51 = vld [vmem:[%s3023_s9 + $0x4c] ss:$16 sps:$4 sm:$0xff]   ;;  %v3596_v54 = vld [vmem:[%s3023_s9 + $0x40] ss:$16 sps:$4 sm:$0xff]  }
 0x58d   : > { %v1474_v60 = vpop.f32.mrf.mxu0  ;;  %v1515_v61 = vpop.f32.mrf.mxu1  ;;  %v3600_v55 = vld [vmem:[%s3023_s9 + $0x48] ss:$16 sps:$4 sm:$0xff]   ;;  %v3814_v58 = vld [vmem:[#allocation33_spill] sm:$0xff] }
 0x58e   : > { %2448 = vpow2.f32 %v2190_v57  ;;  %v2191_v62 = vmul.f32 -1.442695, %v1519_v59  ;;  %v2192_v8 = vmul.f32 -1.442695, %v1521_v5 }
 0x58f   : > { %v1475_v1 = vpop.f32.mrf.mxu0  ;;  %v1516_v2 = vpop.f32.mrf.mxu1 }
 0x590   : > { %2450 = vpow2.f32 %v2191_v62  ;;  %v3817_v2 = vld [vmem:[#allocation34_spill] sm:$0xff] }
 0x591   : > { %2452 = vtanh.f32 %v1520_v7 }
 0x592   : > { %2454 = vpow2.f32 %v2192_v8 }
 0x59b   : > { %v2449_v9 = vpop.eup %2448 }
 0x59c   : > { %v1525_v15 = vadd.f32 1.0, %v2449_v9 }
 0x59d   : > { %v2451_v42 = vpop.eup %2450 }
 0x59e   : > { %2456 = vrcp.f32 %v1525_v15  ;;  %v1531_v37 = vadd.f32 1.0, %v2451_v42  ;;  %v2453_v33 = vpop.eup %2452 }
 0x59f   : > { %v2455_v35 = vpop.eup %2454 }
 0x5a0   : > { %2458 = vrcp.f32 %v1531_v37  ;;  %v1538_v29 = vadd.f32 1.0, %v2455_v35 }
 0x5a2   : > { %2460 = vrcp.f32 %v1538_v29 }
 0x5ab   : > { %v2457_v39 = vpop.eup %2456 }
 0x5ac   : > { %v1542_v10 = vmul.f32 %v2457_v39, %v2453_v33 }
 0x5ad   : > { %v2459_v45 = vpop.eup %2458 }
 0x5ae   : > { %v1541_v30 = vmul.f32 %v2459_v45, %v3462_v52  ;;  %v3560_v52 = vld [vmem:[%s3023_s9 + $0x8c] ss:$16 sps:$4 sm:$0xff]  }
 0x5af   : > { %v2461_v43 = vpop.eup %2460 }
 0x5b0   : > { %v3510_v27 = vadd.f32 %v1542_v10, %v1541_v30 }
 0x5b2   : > { %2462 = vtanh.f32 %v3510_v27 }
 0x5bf   : > { %v2463_v63 = vpop.eup %2462 }
 0x5c0   : > { %v1545_v44 = vmul.f32 %v2463_v63, %v2461_v43  ;;  %v2538_v63 = vld [vmem:[%s3023_s9 + $0x20] ss:$16 sps:$4 sm:$0xff]  }
 0x5c2   : > { %1547 = vst [vmem:[#allocation2 + $0x8] sm:$0xff] %v1545_v44  ;;  %v1553_v28 = vpack.c.bf16 %v1545_v44, %v1545_v44  ;;  %v2539_v44 = vld [vmem:[%s3023_s9 + $0x28] ss:$16 sps:$4 sm:$0xff]  }
 0x5c4   : > { %1587 = vmatmul.mubr.bf16.vlgmr.msra.gmra.mxu0 %v1553_v28  ;;  %1628 = vmatmul.mubr.bf16.vlgmr.msra.gmra.mxu1 %v1553_v28  ;;  %v2540_v28 = vld [vmem:[%s3023_s9 + $0x4] ss:$16 sps:$4 sm:$0xff]  }
 0x5c5   : > { %1673 = vmatpush1.bf16.msra.mxu0 %v3514_v12  ;;  %1714 = vmatpush1.bf16.msra.mxu1 %v3518_v41 }
 0x5c6   : > { %1674 = vmatprep.subr.bf16.mxu0 %v3522_v53  ;;  %1715 = vmatprep.subr.bf16.mxu1 %v3526_v40 }
 0x5c7   : > { %1704 = vmatprep.mubr.bf16.mxu0 %v3804_v25  ;;  %1745 = vmatprep.mubr.bf16.mxu1 %v3804_v25 }
 0x5c9   : > { %1675 = vmatpush1.bf16.msra.mxu0 %v3532_v34  ;;  %1716 = vmatpush1.bf16.msra.mxu1 %v3536_v32 }
 0x5ca   : > { %1676 = vmatprep.subr.bf16.mxu0 %v3540_v38  ;;  %1717 = vmatprep.subr.bf16.mxu1 %v3544_v23 }
 0x5cd   : > { %1677 = vmatpush1.bf16.msra.mxu0 %v3548_v11  ;;  %1718 = vmatpush1.bf16.msra.mxu1 %v3552_v22 }
 0x5ce   : > { %1678 = vmatprep.subr.bf16.mxu0 %v3556_v26  ;;  %1719 = vmatprep.subr.bf16.mxu1 %v3560_v52 }
 0x5d1   : > { %1679 = vmatpush1.bf16.msra.mxu0 %v3564_v36  ;;  %1720 = vmatpush1.bf16.msra.mxu1 %v3568_v0 }
 0x5d2   : > { %1680 = vmatprep.subr.bf16.mxu0 %v3572_v31  ;;  %1721 = vmatprep.subr.bf16.mxu1 %v3576_v24 }
 0x5d5   : > { %1681 = vmatpush1.bf16.msra.mxu0 %v3580_v48  ;;  %1722 = vmatpush1.bf16.msra.mxu1 %v3584_v49 }
 0x5d6   : > { %1682 = vmatprep.subr.bf16.mxu0 %v3588_v50  ;;  %1723 = vmatprep.subr.bf16.mxu1 %v3592_v51 }
 0x5d9   : > { %1683 = vmatpush1.bf16.msra.mxu0 %v3596_v54  ;;  %1724 = vmatpush1.bf16.msra.mxu1 %v3600_v55 }
 0x5da   : > { %1684 = vmatprep.subr.bf16.mxu0 %v3172_v13  ;;  %1725 = vmatprep.subr.bf16.mxu1 %v3175_v14 }
 0x5dd   : > { %1685 = vmatpush1.bf16.msra.mxu0 %v3182_v16  ;;  %1726 = vmatpush1.bf16.msra.mxu1 %v3185_v17  ;;  %v3815_v17 = vld [vmem:[#allocation35_spill] sm:$0xff] }
 0x5de   : > { %1686 = vmatprep.subr.bf16.mxu0 %v3190_v18  ;;  %1727 = vmatprep.subr.bf16.mxu1 %v3193_v19 }
 0x5e1   : > { %1687 = vmatpush1.bf16.msra.mxu0 %v3198_v20  ;;  %1728 = vmatpush1.bf16.msra.mxu1 %v3201_v21  ;;  %v3816_v21 = vld [vmem:[#allocation36_spill] sm:$0xff] }
 0x5e2   : > { %1790 = vmatprep.subr.bf16.mxu0 %v3498_v46  ;;  %1831 = vmatprep.subr.bf16.mxu1 %v3502_v47 }
 0x684   : > { %v1588_v57 = vpop.f32.mrf.mxu0  ;;  %v1629_v13 = vpop.f32.mrf.mxu1 }
 0x685   : > { %v1636_v14 = vadd.f32 %v1588_v57, %v3814_v58  ;;  %v1638_v47 = vadd.f32 %v1629_v13, %v3817_v2 }
 0x686   : > { %v1590_v59 = vpop.f32.mrf.mxu0  ;;  %v1631_v16 = vpop.f32.mrf.mxu1 }
 0x687   : > { %v2193_v60 = vmul.f32 -1.442695, %v1636_v14  ;;  %v1637_v61 = vadd.f32 %v1590_v59, %v3815_v17  ;;  %v1639_v46 = vadd.f32 %v1631_v16, %v3816_v21 }
 0x688   : > { %v1592_v18 = vpop.f32.mrf.mxu0  ;;  %v1633_v62 = vpop.f32.mrf.mxu1 }
 0x689   : > { %2464 = vpow2.f32 %v2193_v60  ;;  %v2194_v19 = vmul.f32 -1.442695, %v1637_v61  ;;  %v2195_v4 = vmul.f32 -1.442695, %v1639_v46 }
 0x68a   : > { %v1593_v20 = vpop.f32.mrf.mxu0  ;;  %v1634_v1 = vpop.f32.mrf.mxu1 }
 0x68b   : > { %2466 = vpow2.f32 %v2194_v19 }
 0x68c   : > { %2468 = vtanh.f32 %v1638_v47 }
 0x68d   : > { %2470 = vpow2.f32 %v2195_v4  ;;  %v3822_v4 = vld [vmem:[#allocation41_spill] sm:$0xff] }
 0x696   : > { %v2465_v5 = vpop.eup %2464 }
 0x697   : > { %v1643_v6 = vadd.f32 1.0, %v2465_v5 }
 0x698   : > { %v2467_v7 = vpop.eup %2466 }
 0x699   : > { %2472 = vrcp.f32 %v1643_v6  ;;  %v1649_v8 = vadd.f32 1.0, %v2467_v7  ;;  %v2469_v9 = vpop.eup %2468 }
 0x69a   : > { %v2471_v15 = vpop.eup %2470 }
 0x69b   : > { %2474 = vrcp.f32 %v1649_v8  ;;  %v1656_v35 = vadd.f32 1.0, %v2471_v15 }
 0x69d   : > { %2476 = vrcp.f32 %v1656_v35 }
 0x6a6   : > { %v2473_v42 = vpop.eup %2472 }
 0x6a7   : > { %v1660_v37 = vmul.f32 %v2473_v42, %v2469_v9 }
 0x6a8   : > { %v2475_v33 = vpop.eup %2474 }
 0x6a9   : > { %v1659_v39 = vmul.f32 %v2475_v33, %v3510_v27  ;;  %v2537_v27 = vld [vmem:[%s3023_s9 + $0x2c] ss:$16 sps:$4 sm:$0xff]  }
 0x6aa   : > { %v2477_v45 = vpop.eup %2476 }
 0x6ab   : > { %v3618_v10 = vadd.f32 %v1660_v37, %v1659_v39 }
 0x6ad   : > { %2478 = vtanh.f32 %v3618_v10 }
 0x6ba   : > { %v2479_v29 = vpop.eup %2478 }
 0x6bb   : > { %v1663_v30 = vmul.f32 %v2479_v29, %v2477_v45 }
 0x6bd   : > { %1665 = vst [vmem:[#allocation2 + $0x20] sm:$0xff] %v1663_v30  ;;  %v1671_v43 = vpack.c.bf16 %v1663_v30, %v1663_v30 }
 0x6bf   : > { %1705 = vmatmul.mubr.bf16.vlgmr.msra.gmra.mxu0 %v1671_v43  ;;  %1746 = vmatmul.mubr.bf16.vlgmr.msra.gmra.mxu1 %v1671_v43 }
 0x6c0   : > { %1791 = vmatpush1.bf16.msra.mxu0 %v3514_v12  ;;  %1832 = vmatpush1.bf16.msra.mxu1 %v3518_v41  ;;  %v2541_v12 = vld [vmem:[%s3023_s9 + $0xc] ss:$16 sps:$4 sm:$0xff]   ;;  %v2542_v41 = vld [vmem:[%s3023_s9] ss:$16 sps:$4 sm:$0xff]  }
 0x6c1   : > { %1792 = vmatprep.subr.bf16.mxu0 %v3522_v53  ;;  %1833 = vmatprep.subr.bf16.mxu1 %v3526_v40  ;;  %v2543_v53 = vld [vmem:[%s3023_s9 + $0x8] ss:$16 sps:$4 sm:$0xff]  }
 0x6c2   : > { %1822 = vmatprep.mubr.bf16.mxu0 %v3804_v25  ;;  %1863 = vmatprep.mubr.bf16.mxu1 %v3804_v25  ;;  %v2536_v25 = vld [vmem:[%s3023_s9 + $0x24] ss:$16 sps:$4 sm:$0xff]  }
 0x6c4   : > { %1793 = vmatpush1.bf16.msra.mxu0 %v3532_v34  ;;  %1834 = vmatpush1.bf16.msra.mxu1 %v3536_v32  ;;  %v3818_v32 = vld [vmem:[#allocation37_spill] sm:$0xff] }
 0x6c5   : > { %1794 = vmatprep.subr.bf16.mxu0 %v3540_v38  ;;  %1835 = vmatprep.subr.bf16.mxu1 %v3544_v23 }
 0x6c8   : > { %1795 = vmatpush1.bf16.msra.mxu0 %v3548_v11  ;;  %1836 = vmatpush1.bf16.msra.mxu1 %v3552_v22 }
 0x6c9   : > { %1796 = vmatprep.subr.bf16.mxu0 %v3556_v26  ;;  %1837 = vmatprep.subr.bf16.mxu1 %v3560_v52  ;;  %v3819_v26 = vld [vmem:[#allocation39_spill] sm:$0xff] }
 0x6cc   : > { %1797 = vmatpush1.bf16.msra.mxu0 %v3564_v36  ;;  %1838 = vmatpush1.bf16.msra.mxu1 %v3568_v0 }
 0x6cd   : > { %1798 = vmatprep.subr.bf16.mxu0 %v3572_v31  ;;  %1839 = vmatprep.subr.bf16.mxu1 %v3576_v24 }
 0x6d0   : > { %1799 = vmatpush1.bf16.msra.mxu0 %v3580_v48  ;;  %1840 = vmatpush1.bf16.msra.mxu1 %v3584_v49  ;;  %v3820_v49 = vld [vmem:[#allocation40_spill] sm:$0xff] }
 0x6d1   : > { %1800 = vmatprep.subr.bf16.mxu0 %v3588_v50  ;;  %1841 = vmatprep.subr.bf16.mxu1 %v3592_v51  ;;  %v3821_v51 = vld [vmem:[#allocation38_spill] sm:$0xff] }
 0x6d4   : > { %1801 = vmatpush1.bf16.msra.mxu0 %v3596_v54  ;;  %1842 = vmatpush1.bf16.msra.mxu1 %v3600_v55 }
 0x6d5   : > { %1802 = vmatprep.subr.bf16.mxu0 %v2536_v25  ;;  %1843 = vmatprep.subr.bf16.mxu1 %v2537_v27 }
 0x6d8   : > { %1803 = vmatpush1.bf16.msra.mxu0 %v2538_v63  ;;  %1844 = vmatpush1.bf16.msra.mxu1 %v2539_v44 }
 0x6d9   : > { %1804 = vmatprep.subr.bf16.mxu0 %v2540_v28  ;;  %1845 = vmatprep.subr.bf16.mxu1 %v2541_v12 }
 0x6dc   : > { %1805 = vmatpush1.bf16.msra.mxu0 %v2542_v41  ;;  %1846 = vmatpush1.bf16.msra.mxu1 %v2543_v53 }
 0x77f   : > { %v1706_v40 = vpop.f32.mrf.mxu0  ;;  %v1747_v34 = vpop.f32.mrf.mxu1 }
 0x780   : > { %v1754_v38 = vadd.f32 %v1706_v40, %v3818_v32  ;;  %v1756_v54 = vadd.f32 %v1747_v34, %v3821_v51 }
 0x781   : > { %v1708_v23 = vpop.f32.mrf.mxu0  ;;  %v1749_v11 = vpop.f32.mrf.mxu1 }
 0x782   : > { %v2196_v22 = vmul.f32 -1.442695, %v1754_v38  ;;  %v1755_v52 = vadd.f32 %v1708_v23, %v3819_v26  ;;  %v1757_v50 = vadd.f32 %v1749_v11, %v3820_v49 }
 0x783   : > { %v1710_v36 = vpop.f32.mrf.mxu0  ;;  %v1751_v0 = vpop.f32.mrf.mxu1 }
 0x784   : > { %2480 = vpow2.f32 %v2196_v22  ;;  %v2197_v31 = vmul.f32 -1.442695, %v1755_v52  ;;  %v2198_v55 = vmul.f32 -1.442695, %v1757_v50 }
 0x785   : > { %v1711_v24 = vpop.f32.mrf.mxu0  ;;  %v1752_v48 = vpop.f32.mrf.mxu1 }
 0x786   : > { %2482 = vpow2.f32 %v2197_v31 }
 0x787   : > { %2484 = vtanh.f32 %v1756_v54 }
 0x788   : > { %2486 = vpow2.f32 %v2198_v55 }
 0x791   : > { %v2481_v57 = vpop.eup %2480 }
 0x792   : > { %v1761_v13 = vadd.f32 1.0, %v2481_v57 }
 0x793   : > { %v2483_v58 = vpop.eup %2482 }
 0x794   : > { %2488 = vrcp.f32 %v1761_v13  ;;  %v1767_v14 = vadd.f32 1.0, %v2483_v58  ;;  %v2485_v59 = vpop.eup %2484 }
 0x795   : > { %v2487_v16 = vpop.eup %2486 }
 0x796   : > { %2490 = vrcp.f32 %v1767_v14  ;;  %v1774_v18 = vadd.f32 1.0, %v2487_v16 }
 0x798   : > { %2492 = vrcp.f32 %v1774_v18 }
 0x7a1   : > { %v2489_v60 = vpop.eup %2488 }
 0x7a2   : > { %v1778_v17 = vmul.f32 %v2489_v60, %v2485_v59 }
 0x7a3   : > { %v2491_v61 = vpop.eup %2490 }
 0x7a4   : > { %v1777_v62 = vmul.f32 %v2491_v61, %v3618_v10  ;;  %v3823_v10 = vld [vmem:[#allocation42_spill] sm:$0xff] }
 0x7a5   : > { %v2493_v20 = vpop.eup %2492 }
 0x7a6   : > { %v1779_v19 = vadd.f32 %v1778_v17, %v1777_v62 }
 0x7a8   : > { %2494 = vtanh.f32 %v1779_v19 }
 0x7b5   : > { %v2495_v1 = vpop.eup %2494 }
 0x7b6   : > { %v1781_v21 = vmul.f32 %v2495_v1, %v2493_v20 }
 0x7b8   : > { %1783 = vst [vmem:[#allocation2 + $0x28] sm:$0xff] %v1781_v21  ;;  %v1789_v46 = vpack.c.bf16 %v1781_v21, %v1781_v21 }
 0x7ba   : > { %1823 = vmatmul.mubr.bf16.vlgmr.msra.gmra.mxu0 %v1789_v46  ;;  %1864 = vmatmul.mubr.bf16.vlgmr.msra.gmra.mxu1 %v1789_v46 }
 0x87a   : > { %v1824_v2 = vpop.f32.mrf.mxu0  ;;  %v1865_v47 = vpop.f32.mrf.mxu1 }
 0x87b   : > { %v1872_v5 = vadd.f32 %v1824_v2, %v3822_v4  ;;  %v1874_v45 = vadd.f32 %v1865_v47, %v3823_v10 }
 0x87c   : > { %v1826_v6 = vpop.f32.mrf.mxu0  ;;  %v1867_v7 = vpop.f32.mrf.mxu1 }
 0x87d   : > { %v2199_v8 = vmul.f32 -1.442695, %v1872_v5  ;;  %v1873_v9 = vadd.f32 %v1826_v6, %v3326_v56  ;;  %v1875_v39 = vadd.f32 %v1867_v7, %v3329_v3 }
 0x87e   : > { %v1828_v15 = vpop.f32.mrf.mxu0  ;;  %v1869_v42 = vpop.f32.mrf.mxu1 }
 0x87f   : > { %2496 = vpow2.f32 %v2199_v8  ;;  %v2200_v37 = vmul.f32 -1.442695, %v1873_v9  ;;  %v2201_v29 = vmul.f32 -1.442695, %v1875_v39 }
 0x880   : > { %v1829_v33 = vpop.f32.mrf.mxu0  ;;  %v1870_v35 = vpop.f32.mrf.mxu1 }
 0x881   : > { %2498 = vpow2.f32 %v2200_v37 }
 0x882   : > { %2500 = vtanh.f32 %v1874_v45 }
 0x883   : > { %2502 = vpow2.f32 %v2201_v29 }
 0x88c   : > { %v2497_v30 = vpop.eup %2496 }
 0x88d   : > { %v1879_v43 = vadd.f32 1.0, %v2497_v30 }
 0x88e   : > { %v2499_v25 = vpop.eup %2498 }
 0x88f   : > { %2504 = vrcp.f32 %v1879_v43  ;;  %v1885_v56 = vadd.f32 1.0, %v2499_v25  ;;  %v2501_v27 = vpop.eup %2500 }
 0x890   : > { %v2503_v63 = vpop.eup %2502 }
 0x891   : > { %2506 = vrcp.f32 %v1885_v56  ;;  %v1892_v12 = vadd.f32 1.0, %v2503_v63 }
 0x893   : > { %2508 = vrcp.f32 %v1892_v12 }
 0x89c   : > { %v2505_v44 = vpop.eup %2504 }
 0x89d   : > { %v1896_v3 = vmul.f32 %v2505_v44, %v2501_v27 }
 0x89e   : > { %v2507_v28 = vpop.eup %2506 }
 0x89f   : > { %v1895_v41 = vmul.f32 %v2507_v28, %v1779_v19 }
 0x8a1   : > { %v1897_v53 = vadd.f32 %v1896_v3, %v1895_v41 }
 0x8a3   : > { %2510 = vtanh.f32 %v1897_v53  ;;  %1903 = vst [vmem:[%s3035_s8] sm:$0xff] %v1897_v53 }
 0x8a4   : > { %2667 = shalt.err (!%p2664_p3)
}
 0x8a5   : > { %s2668_s20 = scalar_lea.hbm %s3669_s30, 128  ;;  %s2672_s10 = scalar_lea.hbm %s3744_s5, 256 }
 0x8a6   : > { %p2669_p12 = scmp.ne.s32.totalorder %s3669_s30, %s2668_s20  ;;  %p2673_p8 = scmp.lt.s32.totalorder %s3669_s30, %s3744_s5 }
 0x8a7   : > { %p2674_p6 = scmp.lt.s32.totalorder %s2672_s10, %s2668_s20 }
 0x8a8   : > { %p2670_p7 = pnand %p2669_p12, %p3824_p11 }
 0x8a9   : > { %p2675_p2 = por %p2674_p6, %p2673_p8 }
 0x8aa   : > { %p2671_p9 = pneg %p2670_p7 }
 0x8ac   : > { %p2676_p10 = pnand %p2675_p2, %p2671_p9 }
 0x8ae   : > { %2679 = shalt.err (!%p2676_p10)
}
 0x8af   : > { %2222 = dma.vmem_to_hbm [thread:$0]  (%p3824_p11), %s3671_s12, 128, %s3669_s30, %s1910_s15   ;;  %v2509_v40 = vpop.eup %2508 }
 0x8b0   : > { %s1923_s17 = sshll.u32 %s3033_s23, 4  ;;  %v2511_v34 = vpop.eup %2510  ;;  %s3701_s8 = scalar_lea.hbm %s3743_s4, %s2204_s28  ;;  %s1924_s17 = int_to_ptr.vmem [resolvable:$true] %s1923_s17 }
 0x8b1   : > { %v1899_v32 = vmul.f32 %v2511_v34, %v2509_v40  ;;  %s1905_s26 = scalar_lea.sflag [#allocation6], %s3013_s21  ;;  %s2680_s2 = scalar_lea.vmem %s1924_s17, 128 }
 0x8b2   : > { %p2681_p4 = scmp.ne.s32.totalorder %s1924_s17, %s2680_s2  ;;  %s2768_s12 = smov [#allocation12]  }
 0x8b3   : > { %1901 = vst [vmem:[#allocation2 + $0x38] sm:$0xff] %v1899_v32  ;;  %1902 = vst [vmem:[%s3033_s23] sm:$0xff] %v1899_v32  ;;  %s2684_s30 = sshll.u32 %s2768_s12, 4  ;;  %s2685_s30 = int_to_ptr.vmem [resolvable:$false] %s2684_s30 }
 0x8b4   : > { %p2682_p13 = pnand %p2681_p4, %p3824_p11  ;;  %s2686_s15 = scalar_lea.vmem %s2685_s30, 256 }
 0x8b5   : > { %p2687_p1 = scmp.lt.s32.totalorder %s1924_s17, %s2685_s30  ;;  %p2688_p0 = scmp.lt.s32.totalorder %s2686_s15, %s2680_s2 }
 0x8b6   : > { %p2683_p5 = pneg %p2682_p13 }
 0x8b7   : > { %p2689_p3 = por %p2688_p0, %p2687_p1 }
 0x8b9   : > { %p2690_p12 = pnand %p2689_p3, %p2683_p5 }
 0x8bb   : > { %2693 = shalt.err (!%p2690_p12)
}
 0x8bc   : > { %s2694_s24 = scalar_lea.hbm %s3701_s8, 128  ;;  %s2698_s28 = scalar_lea.hbm %s3743_s4, 256 }
 0x8bd   : > { %p2695_p7 = scmp.ne.s32.totalorder %s3701_s8, %s2694_s24  ;;  %p2699_p6 = scmp.lt.s32.totalorder %s3701_s8, %s3743_s4 }
 0x8be   : > { %p2700_p2 = scmp.lt.s32.totalorder %s2698_s28, %s2694_s24 }
 0x8bf   : > { %p2696_p9 = pnand %p2695_p7, %p3824_p11 }
 0x8c0   : > { %p2701_p10 = por %p2700_p2, %p2699_p6 }
 0x8c1   : > { %p2697_p8 = pneg %p2696_p9 }
 0x8c3   : > { %p2702_p4 = pnand %p2701_p10, %p2697_p8 }
 0x8c5   : > { %2705 = shalt.err (!%p2702_p4)
}
 0x8c6   : > { %2221 = dma.vmem_to_hbm [thread:$0]  (%p3824_p11), %s1924_s17, 128, %s3701_s8, %s1905_s26  }
 0x8c7 PF: > { %s3825_s1 = sld [smem:[#allocation21_spill]]  ;;  %s1948_s14 = sand.u32 1, %s2744_s18  }
 0x8c8   : > { %p3826_p13 = scmp.ne.s32.totalorder %s3772_s7, 0  ;;  %s1949_s20 = scalar_lea.sflag [#allocation6], %s1948_s14 }
 0x8cd   : > { %p3827_p5 = scmp.ge.s32.totalorder %s3825_s1, 2 }
 0x8cf   : > { %p2240_p1 = pnand %p3827_p5, %p3826_p13 }
 0x8d1   : > { %p2241_p0 = pneg %p2240_p1 }
 0x8d3   : > { %2735 = dma.done.wait (%p2241_p0), %s1949_s20, 128  }
 0x8d4   : > { %2737 = vsyncadd (%p2241_p0), %s1949_s20, 4294967168  ;;  %s1958_s22 = scalar_lea.sflag [#allocation14], %s1948_s14 }
 0x8d5   : > { %2739 = dma.done.wait (%p2241_p0), %s1958_s22, 128  }
 0x8d6   : > { %2741 = vsyncadd (%p2241_p0), %s1958_s22, 4294967168  ;;  %s3828_s21 = sld [smem:[#allocation22_spill]]  ;;  %s3831_s18 = smov %s2748_s19 }
 0x8d7   : > { %s3829_s29 = sld [smem:[#allocation20_spill]] }
 0x8d8   : > { %s3830_s20 = sld [smem:[#allocation23_spill]] }
 0x8dc   : > { %p26_p11 = scmp.ge.s32.totalorder %s3828_s21, 4  }
 0x8dd   : > { %s3832_s19 = smov %s3829_s29 }
 0x8de   :  { %28 = sbr.rel (!%p26_p11) target bundleno = 13 (0xd), region = 145 }
 0x8e3   :  { %1963 = vsyncpa [#allocation5], 1 }
 0x8e4   :  { %1965 = vsyncpa [#allocation5 + $0x1], 1 }
 0x8e5   :  { %1966 = vsyncpa [#allocation8], 1 }
 0x8e6   :  { %1968 = vsyncpa [#allocation8 + $0x1], 1 }
 0x8e7   :  { %1969 = vsyncpa [#allocation11], 1 }
 0x8e8   :  { %1971 = vsyncpa [#allocation11 + $0x1], 1 }
 0x8e9   :  { %1972 = vsyncpa [#allocation6], 1 }
 0x8ea   :  { %1974 = vsyncpa [#allocation6 + $0x1], 1 }
 0x8eb   :  { %1975 = vsyncpa [#allocation14], 1 }
 0x8ec   :  { %1977 = vsyncpa [#allocation14 + $0x1], 1 }

</bundles_post_ra>
